<compile_context>
chip_gen: v5e
topology: v5e:2x2
jax: 0.10.0
libtpu: 0.0.40
codegen_flags: <defaults>
</compile_context>

<pallas_src>
import functools

import jax
import jax.numpy as jnp
from jax.experimental import pallas as pl
from jax.experimental.pallas import tpu as pltpu

BLOCK_SIZE = 8          # max sequence length (size of the causal mask buffer)
HEAD_SIZE = 384
N_EMBED = 384           # numberOfEmbeddingDimensions
DROPOUT_P = 0.3


def _head_kernel(*refs, B, T, H, scale, training):
    """Fused QKV projection + causal attention for all B batches in one invocation."""
    if training:
        x_ref, w_ref, drop_ref, o_ref = refs
    else:
        x_ref, w_ref, o_ref = refs
        drop_ref = None

    # One wide projection on the MXU: (B*T, C) @ (C, 3H) -> (B*T, 3H), f32 accumulation.
    qkv = jnp.dot(x_ref[...], w_ref[...], preferred_element_type=jnp.float32)

    # Causal mask (tril) built once, reused for every batch.
    row_i = jax.lax.broadcasted_iota(jnp.int32, (T, T), 0)
    col_i = jax.lax.broadcasted_iota(jnp.int32, (T, T), 1)
    causal = col_i <= row_i

    # B is tiny and static -> unrolled Python loop keeps every matmul 2-D.
    for b in range(B):
        rows = qkv[b * T:(b + 1) * T]          # (T, 3H), static, sublane-aligned slice
        q = rows[:, :H]                        # lane-aligned slices (H multiple of 128)
        k = rows[:, H:2 * H]
        v = rows[:, 2 * H:]

        # q @ k^T without materializing a transpose: contract last dim of both operands.
        s = jax.lax.dot_general(
            q, k, (((1,), (1,)), ((), ())),
            preferred_element_type=jnp.float32) * scale          # (T, T)
        s = jnp.where(causal, s, -1e30)

        # Softmax along the last axis (f32 throughout).
        m = jnp.max(s, axis=-1, keepdims=True)
        e = jnp.exp(s - m)
        w = e / jnp.sum(e, axis=-1, keepdims=True)

        if training:
            # Pre-scaled keep mask: keep/(1-p) or 0 (inverted dropout).
            w = w * drop_ref[b]

        out = jnp.dot(w, v, preferred_element_type=jnp.float32)  # (T, H)
        o_ref[b] = out.astype(o_ref.dtype)


@functools.partial(jax.jit, static_argnames=("training",))
def head_forward(x, wq, wk, wv, dropout_key=None, *, training=False):
    B, T, C = x.shape
    H = wq.shape[1]
    scale = float(H) ** -0.5                       # == headSize ** -0.5

    # Fuse the three projection weights -> single (C, 3H) bf16 operand (one DMA stream),
    # and flatten x to (B*T, C) bf16 so one matmul covers every row.
    wqkv = jnp.concatenate([wq, wk, wv], axis=1).astype(jnp.bfloat16)
    x2d = x.reshape(B * T, C).astype(jnp.bfloat16)

    kernel = functools.partial(
        _head_kernel, B=B, T=T, H=H, scale=scale, training=training)

    operands = [x2d, wqkv]
    in_specs = [
        pl.BlockSpec((B * T, C), lambda i: (0, 0)),       # activations (bf16)
        pl.BlockSpec((C, 3 * H), lambda i: (0, 0)),       # fused QKV weight (bf16)
    ]
    if training:
        keep = jax.random.bernoulli(dropout_key, 1.0 - DROPOUT_P, (B, T, T))
        drop_scale = keep.astype(jnp.float32) / (1.0 - DROPOUT_P)
        operands.append(drop_scale)
        in_specs.append(pl.BlockSpec((B, T, T), lambda i: (0, 0, 0)))

    return pl.pallas_call(
        kernel,
        out_shape=jax.ShapeDtypeStruct((B, T, H), jnp.float32),
        grid=(1,),                                        # collapsed grid: one invocation
        in_specs=in_specs,
        out_specs=pl.BlockSpec((B, T, H), lambda i: (0, 0, 0)),
        compiler_params=pltpu.CompilerParams(dimension_semantics=("arbitrary",)),
    )(*operands)


def head_reference(x, wq, wk, wv):
    """Pure-JAX reference (eval mode, dropout = identity), same bf16 projection precision."""
    H = wq.shape[1]
    T = x.shape[1]
    xb = x.astype(jnp.bfloat16)
    q = jnp.einsum("btc,ch->bth", xb, wq.astype(jnp.bfloat16),
                   preferred_element_type=jnp.float32)
    k = jnp.einsum("btc,ch->bth", xb, wk.astype(jnp.bfloat16),
                   preferred_element_type=jnp.float32)
    v = jnp.einsum("btc,ch->bth", xb, wv.astype(jnp.bfloat16),
                   preferred_element_type=jnp.float32)
    s = jnp.einsum("btd,bsd->bts", q, k,
                   preferred_element_type=jnp.float32) * (H ** -0.5)
    tril = jnp.tril(jnp.ones((T, T), jnp.float32))
    s = jnp.where(tril == 0, -jnp.inf, s)
    w = jax.nn.softmax(s, axis=-1)
    return jnp.einsum("bts,bsd->btd", w, v, preferred_element_type=jnp.float32)


if __name__ == "__main__":
    key = jax.random.PRNGKey(0)
    kx, kq, kk, kv, kd = jax.random.split(key, 5)

    B, T, C, H = 2, BLOCK_SIZE, N_EMBED, HEAD_SIZE

    x = jax.random.normal(kx, (B, T, C), dtype=jnp.float32)
    # Deterministic synthetic weights (stand-ins for torch.nn.Linear weights, stored as (C, H)).
    wq = 0.02 * jax.random.normal(kq, (C, H), dtype=jnp.float32)
    wk = 0.02 * jax.random.normal(kk, (C, H), dtype=jnp.float32)
    wv = 0.02 * jax.random.normal(kv, (C, H), dtype=jnp.float32)

    # Eval mode (dropout identity) — check against pure-JAX reference.
    out_eval = jax.block_until_ready(head_forward(x, wq, wk, wv, training=False))
    ref = head_reference(x, wq, wk, wv)
    assert out_eval.shape == (B, T, H)
    max_err = float(jnp.max(jnp.abs(out_eval - ref)))
    assert jnp.allclose(out_eval, ref, rtol=2e-2, atol=2e-2), f"mismatch vs reference: {max_err}"

    # Train mode — exercises the dropout-mask path.
    out_train = jax.block_until_ready(head_forward(x, wq, wk, wv, kd, training=True))
    assert out_train.shape == (B, T, H)
    assert bool(jnp.all(jnp.isfinite(out_train)))

    print("KERNEL_OK")
</pallas_src>

<mosaic_0001>
module attributes {stable_mosaic.version = 11 : i64} {
  func.func @_head_kernel(%arg0: i32, %arg1: memref<16x384xbf16, #tpu.memory_space<vmem>>, %arg2: memref<384x1152xbf16, #tpu.memory_space<vmem>>, %arg3: memref<2x8x384xf32, #tpu.memory_space<vmem>>) attributes {dimension_semantics = [#tpu.dimension_semantics<arbitrary>], iteration_bounds = array<i64: 1>, scalar_prefetch = 0 : i64, scratch_operands = 0 : i64, tpu.core_type = #tpu.core_type<tc>, window_params = [{pipeline_mode = #tpu.pipeline_mode<synchronous>, transform_indices = @transform_0, window_bounds = array<i64: 16, 384>}, {pipeline_mode = #tpu.pipeline_mode<synchronous>, transform_indices = @transform_1, window_bounds = array<i64: 384, 1152>}, {pipeline_mode = #tpu.pipeline_mode<synchronous>, transform_indices = @transform_2, window_bounds = array<i64: 2, 8, 384>}]} {
    %c0 = arith.constant 0 : index
    %c0_0 = arith.constant 0 : index
    %0 = vector.load %arg1[%c0, %c0_0] : memref<16x384xbf16, #tpu.memory_space<vmem>>, vector<16x384xbf16>
    %c0_1 = arith.constant 0 : index
    %c0_2 = arith.constant 0 : index
    %1 = vector.load %arg2[%c0_1, %c0_2] : memref<384x1152xbf16, #tpu.memory_space<vmem>>, vector<384x1152xbf16>
    %cst = arith.constant dense<0.000000e+00> : vector<16x1152xf32>
    %2 = tpu.matmul %0, %1, %cst {dimension_numbers = #tpu.dot_dimension_numbers<[1], [0], [0], [1], [0, 0, 1, 1], [], []>} : vector<16x384xbf16>, vector<384x1152xbf16>, vector<16x1152xf32> -> vector<16x1152xf32>
    %3 = tpu.iota {dimensions = array<i32: 0>} : vector<8x8xi32>
    %4 = tpu.iota {dimensions = array<i32: 1>} : vector<8x8xi32>
    %5 = arith.cmpi sle, %4, %3 : vector<8x8xi32>
    %6 = vector.extract_strided_slice %2 {offsets = [0, 0], sizes = [8, 1152], strides = [1, 1]} : vector<16x1152xf32> to vector<8x1152xf32>
    %7 = vector.extract_strided_slice %6 {offsets = [0, 0], sizes = [8, 384], strides = [1, 1]} : vector<8x1152xf32> to vector<8x384xf32>
    %8 = vector.extract_strided_slice %6 {offsets = [0, 384], sizes = [8, 384], strides = [1, 1]} : vector<8x1152xf32> to vector<8x384xf32>
    %9 = vector.extract_strided_slice %6 {offsets = [0, 768], sizes = [8, 384], strides = [1, 1]} : vector<8x1152xf32> to vector<8x384xf32>
    %cst_3 = arith.constant dense<0.000000e+00> : vector<8x8xf32>
    %10 = tpu.matmul %7, %8, %cst_3 {dimension_numbers = #tpu.dot_dimension_numbers<[1], [1], [0], [0], [0, 0, 1, 0], [], []>} : vector<8x384xf32>, vector<8x384xf32>, vector<8x8xf32> -> vector<8x8xf32>
    %cst_4 = arith.constant 0.0510310382 : f32
    %11 = vector.broadcast %cst_4 : f32 to vector<8x8xf32>
    %12 = arith.mulf %10, %11 : vector<8x8xf32>
    %cst_5 = arith.constant -1.000000e+30 : f32
    %13 = vector.broadcast %cst_5 : f32 to vector<8x8xf32>
    %14 = arith.select %5, %12, %13 : vector<8x8xi1>, vector<8x8xf32>
    %cst_6 = arith.constant dense<0xFF800000> : vector<8xf32>
    %15 = vector.multi_reduction <maximumf>, %14, %cst_6 [1] : vector<8x8xf32> to vector<8xf32>
    %16 = vector.shape_cast %15 : vector<8xf32> to vector<8x1xf32>
    %17 = vector.broadcast %16 : vector<8x1xf32> to vector<8x8xf32>
    %18 = arith.subf %14, %17 : vector<8x8xf32>
    %19 = math.exp %18 : vector<8x8xf32>
    %cst_7 = arith.constant dense<0.000000e+00> : vector<8xf32>
    %20 = vector.multi_reduction <add>, %19, %cst_7 [1] : vector<8x8xf32> to vector<8xf32>
    %21 = vector.shape_cast %20 : vector<8xf32> to vector<8x1xf32>
    %22 = vector.broadcast %21 : vector<8x1xf32> to vector<8x8xf32>
    %23 = arith.divf %19, %22 : vector<8x8xf32>
    %cst_8 = arith.constant dense<0.000000e+00> : vector<8x384xf32>
    %24 = tpu.matmul %23, %9, %cst_8 {dimension_numbers = #tpu.dot_dimension_numbers<[1], [0], [0], [1], [0, 0, 1, 1], [], []>} : vector<8x8xf32>, vector<8x384xf32>, vector<8x384xf32> -> vector<8x384xf32>
    %c0_9 = arith.constant 0 : index
    %c0_10 = arith.constant 0 : index
    %c0_11 = arith.constant 0 : index
    %25 = vector.load %arg3[%c0_9, %c0_10, %c0_11] : memref<2x8x384xf32, #tpu.memory_space<vmem>>, vector<1x8x384xf32>
    %26 = vector.shape_cast %25 : vector<1x8x384xf32> to vector<8x384xf32>
    %27 = vector.shape_cast %24 : vector<8x384xf32> to vector<1x8x384xf32>
    tpu.vector_store %arg3[%c0_9, %c0_10, %c0_11], %27 {strides = array<i32>} : memref<2x8x384xf32, #tpu.memory_space<vmem>>, vector<1x8x384xf32>,
    %28 = vector.extract_strided_slice %2 {offsets = [8, 0], sizes = [8, 1152], strides = [1, 1]} : vector<16x1152xf32> to vector<8x1152xf32>
    %29 = vector.extract_strided_slice %28 {offsets = [0, 0], sizes = [8, 384], strides = [1, 1]} : vector<8x1152xf32> to vector<8x384xf32>
    %30 = vector.extract_strided_slice %28 {offsets = [0, 384], sizes = [8, 384], strides = [1, 1]} : vector<8x1152xf32> to vector<8x384xf32>
    %31 = vector.extract_strided_slice %28 {offsets = [0, 768], sizes = [8, 384], strides = [1, 1]} : vector<8x1152xf32> to vector<8x384xf32>
    %cst_12 = arith.constant dense<0.000000e+00> : vector<8x8xf32>
    %32 = tpu.matmul %29, %30, %cst_12 {dimension_numbers = #tpu.dot_dimension_numbers<[1], [1], [0], [0], [0, 0, 1, 0], [], []>} : vector<8x384xf32>, vector<8x384xf32>, vector<8x8xf32> -> vector<8x8xf32>
    %cst_13 = arith.constant 0.0510310382 : f32
    %33 = vector.broadcast %cst_13 : f32 to vector<8x8xf32>
    %34 = arith.mulf %32, %33 : vector<8x8xf32>
    %cst_14 = arith.constant -1.000000e+30 : f32
    %35 = vector.broadcast %cst_14 : f32 to vector<8x8xf32>
    %36 = arith.select %5, %34, %35 : vector<8x8xi1>, vector<8x8xf32>
    %cst_15 = arith.constant dense<0xFF800000> : vector<8xf32>
    %37 = vector.multi_reduction <maximumf>, %36, %cst_15 [1] : vector<8x8xf32> to vector<8xf32>
    %38 = vector.shape_cast %37 : vector<8xf32> to vector<8x1xf32>
    %39 = vector.broadcast %38 : vector<8x1xf32> to vector<8x8xf32>
    %40 = arith.subf %36, %39 : vector<8x8xf32>
    %41 = math.exp %40 : vector<8x8xf32>
    %cst_16 = arith.constant dense<0.000000e+00> : vector<8xf32>
    %42 = vector.multi_reduction <add>, %41, %cst_16 [1] : vector<8x8xf32> to vector<8xf32>
    %43 = vector.shape_cast %42 : vector<8xf32> to vector<8x1xf32>
    %44 = vector.broadcast %43 : vector<8x1xf32> to vector<8x8xf32>
    %45 = arith.divf %41, %44 : vector<8x8xf32>
    %cst_17 = arith.constant dense<0.000000e+00> : vector<8x384xf32>
    %46 = tpu.matmul %45, %31, %cst_17 {dimension_numbers = #tpu.dot_dimension_numbers<[1], [0], [0], [1], [0, 0, 1, 1], [], []>} : vector<8x8xf32>, vector<8x384xf32>, vector<8x384xf32> -> vector<8x384xf32>
    %c1 = arith.constant 1 : index
    %c0_18 = arith.constant 0 : index
    %c0_19 = arith.constant 0 : index
    %47 = vector.load %arg3[%c1, %c0_18, %c0_19] : memref<2x8x384xf32, #tpu.memory_space<vmem>>, vector<1x8x384xf32>
    %48 = vector.shape_cast %47 : vector<1x8x384xf32> to vector<8x384xf32>
    %49 = vector.shape_cast %46 : vector<8x384xf32> to vector<1x8x384xf32>
    tpu.vector_store %arg3[%c1, %c0_18, %c0_19], %49 {strides = array<i32>} : memref<2x8x384xf32, #tpu.memory_space<vmem>>, vector<1x8x384xf32>,
    return
  }
  func.func @transform_0(%arg0: i32) -> (i32, i32) {
    %c0_i32 = arith.constant 0 : i32
    %c0_i32_0 = arith.constant 0 : i32
    %c0_i32_1 = arith.constant 0 : i32
    return %c0_i32, %c0_i32_0 : i32, i32
  }
  func.func @transform_1(%arg0: i32) -> (i32, i32) {
    %c0_i32 = arith.constant 0 : i32
    %c0_i32_0 = arith.constant 0 : i32
    %c0_i32_1 = arith.constant 0 : i32
    return %c0_i32, %c0_i32_0 : i32, i32
  }
  func.func @transform_2(%arg0: i32) -> (i32, i32, i32) {
    %c0_i32 = arith.constant 0 : i32
    %c0_i32_0 = arith.constant 0 : i32
    %c0_i32_1 = arith.constant 0 : i32
    %c0_i32_2 = arith.constant 0 : i32
    return %c0_i32, %c0_i32_0, %c0_i32_1 : i32, i32, i32
  }
}

</mosaic_0001>

<bundles_post_ra>
// kernel: head_forward.1
= control target key start
LH: loop header
LB: loop body
LE: loop exit
PB: predicated region body
PF: predicated region fallthrough
CT: control target
= control target key end

     0   :  { %s4637_s0 = inlined_call_operand.vmem [shape: bf16[16,384], index: 0, kind: input, shape index: {}]   ;;  %s4638_s1 = inlined_call_operand.vmem [shape: bf16[384,1152], index: 1, kind: input, shape index: {}]   ;;  %s4639_s2 = inlined_call_operand.hbm [shape: f32[2,8,384], index: 2, kind: output, shape index: {}]  }
   0x1   :  { %v2349_v0 = vld [vmem:[%s4638_s1 + $0x1f8] sm:$0xf]  ;;  %v3035_v1 = vld [vmem:[%s4638_s1 + $0x218] sm:$0xf0]  ;;  %v2351_v10 = vld [vmem:[%s4638_s1 + $0x21c] sm:$0xf0] }
   0x2   :  { %v2637_v2 = vld [vmem:[%s4638_s1 + $0x438] sm:$0xf]  ;;  %v2350_v3 = vor.u32 %v3035_v1, %v2349_v0  ;;  %v3107_v4 = vld [vmem:[%s4638_s1 + $0x458] sm:$0xf0]  ;;  %v2313_v11 = vld [vmem:[%s4638_s1 + $0x1b0] sm:$0xf] }
   0x3   :  { %v2925_v5 = vld [vmem:[%s4638_s1 + $0x678] sm:$0xf]  ;;  %v3179_v6 = vld [vmem:[%s4638_s1 + $0x698] sm:$0xf0]  ;;  %v2638_v7 = vor.u32 %v3107_v4, %v2637_v2  ;;  %v3026_v13 = vld [vmem:[%s4638_s1 + $0x1d0] sm:$0xf0] }
   0x4   :  { %v2926_v8 = vor.u32 %v3179_v6, %v2925_v5  ;;  %v3031_v9 = vld [vmem:[%s4638_s1 + $0x1fc] sm:$0xf]  ;;  %1376 = vmatpush.bf16.msra.mxu0 %v2350_v3  ;;  %v2601_v14 = vld [vmem:[%s4638_s1 + $0x3f0] sm:$0xf]  ;;  %v3098_v15 = vld [vmem:[%s4638_s1 + $0x410] sm:$0xf0]  ;;  %v2314_v16 = vor.u32 %v3026_v13, %v2313_v11 }
   0x5   :  { %v2354_v12 = vor.u32 %v3031_v9, %v2351_v10  ;;  %1390 = vmatpush.bf16.msra.mxu1 %v2638_v7  ;;  %v2602_v17 = vor.u32 %v3098_v15, %v2601_v14  ;;  %v2889_v18 = vld [vmem:[%s4638_s1 + $0x630] sm:$0xf]  ;;  %v3170_v19 = vld [vmem:[%s4638_s1 + $0x650] sm:$0xf0]  ;;  %v2315_v22 = vld [vmem:[%s4638_s1 + $0x1d4] sm:$0xf0] }
   0x6   :  { %1404 = vmatpush.bf16.msra.mxu2 %v2926_v8  ;;  %v3022_v20 = vld [vmem:[%s4638_s1 + $0x1b4] sm:$0xf]  ;;  %v2890_v21 = vor.u32 %v3170_v19, %v2889_v18  ;;  %v2277_v23 = vld [vmem:[%s4638_s1 + $0x168] sm:$0xf]  ;;  %v3017_v24 = vld [vmem:[%s4638_s1 + $0x188] sm:$0xf0] }
   0x7   :  { %1418 = vmatpush.bf16.msra.mxu3 %v2354_v12  ;;  %v2318_v25 = vor.u32 %v3022_v20, %v2315_v22  ;;  %v2565_v26 = vld [vmem:[%s4638_s1 + $0x3a8] sm:$0xf]  ;;  %v3089_v27 = vld [vmem:[%s4638_s1 + $0x3c8] sm:$0xf0]  ;;  %v2278_v29 = vor.u32 %v3017_v24, %v2277_v23  ;;  %v2279_v32 = vld [vmem:[%s4638_s1 + $0x18c] sm:$0xf0] }
   0x8   :  { %v2853_v28 = vld [vmem:[%s4638_s1 + $0x5e8] sm:$0xf]  ;;  %1377 = vmatpush.bf16.msra.mxu0 %v2314_v16  ;;  %v3161_v30 = vld [vmem:[%s4638_s1 + $0x608] sm:$0xf0]  ;;  %v2566_v33 = vor.u32 %v3089_v27, %v2565_v26  ;;  %v2241_v35 = vld [vmem:[%s4638_s1 + $0x120] sm:$0xf] }
   0x9   :  { %v3013_v31 = vld [vmem:[%s4638_s1 + $0x16c] sm:$0xf]  ;;  %1391 = vmatpush.bf16.msra.mxu1 %v2602_v17  ;;  %v2854_v34 = vor.u32 %v3161_v30, %v2853_v28  ;;  %v3008_v36 = vld [vmem:[%s4638_s1 + $0x140] sm:$0xf0]  ;;  %v2529_v37 = vld [vmem:[%s4638_s1 + $0x360] sm:$0xf] }
   0xa   :  { %1405 = vmatpush.bf16.msra.mxu2 %v2890_v21  ;;  %v2282_v38 = vor.u32 %v3013_v31, %v2279_v32  ;;  %v3080_v39 = vld [vmem:[%s4638_s1 + $0x380] sm:$0xf0]  ;;  %v2817_v40 = vld [vmem:[%s4638_s1 + $0x5a0] sm:$0xf]  ;;  %v2243_v43 = vld [vmem:[%s4638_s1 + $0x144] sm:$0xf0]  ;;  %v2242_v44 = vor.u32 %v3008_v36, %v2241_v35 }
   0xb   :  { %1419 = vmatpush.bf16.msra.mxu3 %v2318_v25  ;;  %v3152_v41 = vld [vmem:[%s4638_s1 + $0x5c0] sm:$0xf0]  ;;  %v2530_v45 = vor.u32 %v3080_v39, %v2529_v37  ;;  %v2205_v47 = vld [vmem:[%s4638_s1 + $0xd8] sm:$0xf]  ;;  %v2999_v48 = vld [vmem:[%s4638_s1 + $0xf8] sm:$0xf0] }
   0xc   :  { %v3004_v42 = vld [vmem:[%s4638_s1 + $0x124] sm:$0xf]  ;;  %1378 = vmatpush.bf16.msra.mxu0 %v2278_v29  ;;  %v2818_v46 = vor.u32 %v3152_v41, %v2817_v40  ;;  %v2493_v49 = vld [vmem:[%s4638_s1 + $0x318] sm:$0xf]  ;;  %v3071_v51 = vld [vmem:[%s4638_s1 + $0x338] sm:$0xf0]  ;;  %v2206_v56 = vor.u32 %v2999_v48, %v2205_v47 }
   0xd   :  { %1392 = vmatpush.bf16.msra.mxu1 %v2566_v33  ;;  %v2246_v50 = vor.u32 %v3004_v42, %v2243_v43  ;;  %v2781_v52 = vld [vmem:[%s4638_s1 + $0x558] sm:$0xf]  ;;  %v3143_v53 = vld [vmem:[%s4638_s1 + $0x578] sm:$0xf0]  ;;  %v2207_v55 = vld [vmem:[%s4638_s1 + $0xfc] sm:$0xf0]  ;;  %v2494_v57 = vor.u32 %v3071_v51, %v2493_v49 }
   0xe   :  { %1406 = vmatpush.bf16.msra.mxu2 %v2854_v34  ;;  %v2995_v54 = vld [vmem:[%s4638_s1 + $0xdc] sm:$0xf]  ;;  %v2782_v58 = vor.u32 %v3143_v53, %v2781_v52  ;;  %v2169_v59 = vld [vmem:[%s4638_s1 + $0x90] sm:$0xf]  ;;  %v2990_v60 = vld [vmem:[%s4638_s1 + $0xb0] sm:$0xf0] }
   0xf   :  { %1420 = vmatpush.bf16.msra.mxu3 %v2282_v38  ;;  %v2457_v61 = vld [vmem:[%s4638_s1 + $0x2d0] sm:$0xf]  ;;  %v2210_v62 = vor.u32 %v2995_v54, %v2207_v55  ;;  %v3062_v63 = vld [vmem:[%s4638_s1 + $0x2f0] sm:$0xf0]  ;;  %v2171_v3 = vld [vmem:[%s4638_s1 + $0xb4] sm:$0xf0]  ;;  %v2170_v4 = vor.u32 %v2990_v60, %v2169_v59 }
  0x10   :  { %1379 = vmatpush.bf16.msra.mxu0 %v2242_v44  ;;  %v2745_v0 = vld [vmem:[%s4638_s1 + $0x510] sm:$0xf]  ;;  %v3134_v1 = vld [vmem:[%s4638_s1 + $0x530] sm:$0xf0]  ;;  %v2458_v5 = vor.u32 %v3062_v63, %v2457_v61  ;;  %v2133_v7 = vld [vmem:[%s4638_s1 + $0x48] sm:$0xf] }
  0x11   :  { %1393 = vmatpush.bf16.msra.mxu1 %v2530_v45  ;;  %v2986_v2 = vld [vmem:[%s4638_s1 + $0x94] sm:$0xf]  ;;  %v2746_v6 = vor.u32 %v3134_v1, %v2745_v0  ;;  %v2981_v8 = vld [vmem:[%s4638_s1 + $0x68] sm:$0xf0]  ;;  %v2421_v9 = vld [vmem:[%s4638_s1 + $0x288] sm:$0xf] }
  0x12   :  { %1407 = vmatpush.bf16.msra.mxu2 %v2818_v46  ;;  %v2174_v10 = vor.u32 %v2986_v2, %v2171_v3  ;;  %v3053_v11 = vld [vmem:[%s4638_s1 + $0x2a8] sm:$0xf0]  ;;  %v2709_v12 = vld [vmem:[%s4638_s1 + $0x4c8] sm:$0xf]  ;;  %v2135_v15 = vld [vmem:[%s4638_s1 + $0x6c] sm:$0xf0]  ;;  %v2134_v16 = vor.u32 %v2981_v8, %v2133_v7 }
  0x13   :  { %1421 = vmatpush.bf16.msra.mxu3 %v2246_v50  ;;  %v3125_v13 = vld [vmem:[%s4638_s1 + $0x4e8] sm:$0xf0]  ;;  %v2097_v17 = vld [vmem:[%s4638_s1] sm:$0xf]  ;;  %v2972_v18 = vld [vmem:[%s4638_s1 + $0x20] sm:$0xf0]  ;;  %v2422_v19 = vor.u32 %v3053_v11, %v2421_v9 }
  0x14   :  { %1380 = vmatpush.bf16.msra.mxu0 %v2206_v56  ;;  %v2977_v14 = vld [vmem:[%s4638_s1 + $0x4c] sm:$0xf]  ;;  %v2710_v20 = vor.u32 %v3125_v13, %v2709_v12  ;;  %v2385_v21 = vld [vmem:[%s4638_s1 + $0x240] sm:$0xf]  ;;  %v3044_v22 = vld [vmem:[%s4638_s1 + $0x260] sm:$0xf0]  ;;  %v2098_v31 = vor.u32 %v2972_v18, %v2097_v17 }
  0x15   :  { %1394 = vmatpush.bf16.msra.mxu1 %v2494_v57  ;;  %v2673_v23 = vld [vmem:[%s4638_s1 + $0x480] sm:$0xf]  ;;  %v2138_v24 = vor.u32 %v2977_v14, %v2135_v15  ;;  %v3116_v25 = vld [vmem:[%s4638_s1 + $0x4a0] sm:$0xf0]  ;;  %v3103_v26 = vld [vmem:[%s4638_s1 + $0x43c] sm:$0xf]  ;;  %v2386_v35 = vor.u32 %v3044_v22, %v2385_v21 }
  0x16   :  { %1408 = vmatpush.bf16.msra.mxu2 %v2782_v58  ;;  %v2639_v27 = vld [vmem:[%s4638_s1 + $0x45c] sm:$0xf0]  ;;  %v3175_v28 = vld [vmem:[%s4638_s1 + $0x67c] sm:$0xf]  ;;  %v3036_v32 = vld [vmem:[%s4638_s1 + $0x220] sm:$0xf0]  ;;  %v2674_v36 = vor.u32 %v3116_v25, %v2673_v23 }
  0x17   :  { %1422 = vmatpush.bf16.msra.mxu3 %v2210_v62  ;;  %v2927_v29 = vld [vmem:[%s4638_s1 + $0x69c] sm:$0xf0]  ;;  %v2968_v33 = vld [vmem:[%s4638_s1 + $0x4] sm:$0xf]  ;;  %v2099_v34 = vld [vmem:[%s4638_s1 + $0x24] sm:$0xf0]  ;;  %v2642_v39 = vor.u32 %v3103_v26, %v2639_v27 }
  0x18   :  { %1381 = vmatpush.bf16.msra.mxu0 %v2170_v4  ;;  %v2357_v30 = vld [vmem:[%s4638_s1 + $0x200] sm:$0xf]  ;;  %v3108_v38 = vld [vmem:[%s4638_s1 + $0x460] sm:$0xf0]  ;;  %v2930_v40 = vor.u32 %v3175_v28, %v2927_v29  ;;  %v3094_v41 = vld [vmem:[%s4638_s1 + $0x3f4] sm:$0xf]  ;;  %v2102_v43 = vor.u32 %v2968_v33, %v2099_v34 }
  0x19   :  { %1395 = vmatpush.bf16.msra.mxu1 %v2458_v5  ;;  %v2645_v37 = vld [vmem:[%s4638_s1 + $0x440] sm:$0xf]  ;;  %v2358_v42 = vor.u32 %v3036_v32, %v2357_v30  ;;  %v2603_v44 = vld [vmem:[%s4638_s1 + $0x414] sm:$0xf0]  ;;  %v3166_v45 = vld [vmem:[%s4638_s1 + $0x634] sm:$0xf] }
  0x1a   :  { %1409 = vmatpush.bf16.msra.mxu2 %v2746_v6  ;;  %v2891_v46 = vld [vmem:[%s4638_s1 + $0x654] sm:$0xf0]  ;;  %v2646_v47 = vor.u32 %v3108_v38, %v2645_v37  ;;  %v3027_v49 = vld [vmem:[%s4638_s1 + $0x1d8] sm:$0xf0]  ;;  %v2606_v52 = vor.u32 %v3094_v41, %v2603_v44  ;;  %v3085_v54 = vld [vmem:[%s4638_s1 + $0x3ac] sm:$0xf] }
  0x1b   :  { %1423 = vmatpush.bf16.msra.mxu3 %v2174_v10  ;;  %v2321_v48 = vld [vmem:[%s4638_s1 + $0x1b8] sm:$0xf]  ;;  %v3099_v51 = vld [vmem:[%s4638_s1 + $0x418] sm:$0xf0]  ;;  %v2894_v53 = vor.u32 %v3166_v45, %v2891_v46  ;;  %v2567_v55 = vld [vmem:[%s4638_s1 + $0x3cc] sm:$0xf0] }
  0x1c   :  { %1382 = vmatpush.bf16.msra.mxu0 %v2134_v16  ;;  %v2609_v50 = vld [vmem:[%s4638_s1 + $0x3f8] sm:$0xf]  ;;  %v3157_v56 = vld [vmem:[%s4638_s1 + $0x5ec] sm:$0xf]  ;;  %v2322_v57 = vor.u32 %v3027_v49, %v2321_v48  ;;  %v2855_v58 = vld [vmem:[%s4638_s1 + $0x60c] sm:$0xf0]  ;;  %v2570_v5 = vor.u32 %v3085_v54, %v2567_v55 }
  0x1d   :  { %1396 = vmatpush.bf16.msra.mxu1 %v2422_v19  ;;  %v2093_v59 = vld [vmem:[%s4637_s0 + $0x8] sm:$0xf]  ;;  %v2967_v60 = vld [vmem:[%s4637_s0 + $0x10] sm:$0xf0]  ;;  %v2610_v61 = vor.u32 %v3099_v51, %v2609_v50  ;;  %v2285_v62 = vld [vmem:[%s4638_s1 + $0x170] sm:$0xf]  ;;  %v2858_v6 = vor.u32 %v3157_v56, %v2855_v58 }
  0x1e   :  { %1410 = vmatpush.bf16.msra.mxu2 %v2710_v20  ;;  %v3018_v63 = vld [vmem:[%s4638_s1 + $0x190] sm:$0xf0]  ;;  %v2573_v0 = vld [vmem:[%s4638_s1 + $0x3b0] sm:$0xf]  ;;  %v3506_v1 = vor.u32 %v2967_v60, %v2093_v59  ;;  %v3076_v3 = vld [vmem:[%s4638_s1 + $0x364] sm:$0xf] }
  0x1f   :  { %1424 = vmatpush.bf16.msra.mxu3 %v2138_v24  ;;  %v3090_v2 = vld [vmem:[%s4638_s1 + $0x3d0] sm:$0xf0]  ;;  %v2531_v4 = vld [vmem:[%s4638_s1 + $0x384] sm:$0xf0]  ;;  %v3148_v7 = vld [vmem:[%s4638_s1 + $0x5a4] sm:$0xf]  ;;  %v2286_v10 = vor.u32 %v3018_v63, %v2285_v62 }
  0x20   :  { %1383 = vmatpush.bf16.msra.mxu0 %v2098_v31  ;;  %v2085_v8 = vld [vmem:[%s4637_s0] sm:$0xf]  ;;  %v2966_v9 = vld [vmem:[%s4637_s0 + $0x8] sm:$0xf0]  ;;  %v2819_v11 = vld [vmem:[%s4638_s1 + $0x5c4] sm:$0xf0]  ;;  %v2574_v15 = vor.u32 %v3090_v2, %v2573_v0  ;;  %v2534_v21 = vor.u32 %v3076_v3, %v2531_v4 }
  0x21   :  { %1397 = vmatpush.bf16.msra.mxu1 %v2386_v35  ;;  %v3529_v12 = vor.u32 %v2966_v9, %v2085_v8  ;;  %v2965_v13 = vld [vmem:[%s4637_s0 + $0x4] sm:$0xf]  ;;  %v2087_v14 = vld [vmem:[%s4637_s0 + $0xc] sm:$0xf0]  ;;  %v2249_v16 = vld [vmem:[%s4638_s1 + $0x128] sm:$0xf]  ;;  %v2822_v22 = vor.u32 %v3148_v7, %v2819_v11 }
  0x22   :  { %1411 = vmatpush.bf16.msra.mxu2 %v2674_v36  ;;  %v3009_v17 = vld [vmem:[%s4638_s1 + $0x148] sm:$0xf0]  ;;  %v3544_v18 = vor.u32 %v2965_v13, %v2087_v14  ;;  %v2537_v19 = vld [vmem:[%s4638_s1 + $0x368] sm:$0xf]  ;;  %v3067_v23 = vld [vmem:[%s4638_s1 + $0x31c] sm:$0xf] }
  0x23   :  { %1425 = vmatpush.bf16.msra.mxu3 %v2102_v43  ;;  %v3081_v20 = vld [vmem:[%s4638_s1 + $0x388] sm:$0xf0]  ;;  %1384 = vmatmul.bf16.vlgmr.msra.gmra.mxu0 %v3529_v12  ;;  %v2250_v24 = vor.u32 %v3009_v17, %v2249_v16  ;;  %v2495_v25 = vld [vmem:[%s4638_s1 + $0x33c] sm:$0xf0]  ;;  %v3139_v26 = vld [vmem:[%s4638_s1 + $0x55c] sm:$0xf] }
  0x24   :  { %1432 = vmatpush.bf16.msrb.mxu0 %v2642_v39  ;;  %v2783_v27 = vld [vmem:[%s4638_s1 + $0x57c] sm:$0xf0]  ;;  %1398 = vmatmul.bf16.vlgmr.msra.gmra.mxu1 %v3544_v18  ;;  %v2538_v28 = vor.u32 %v3081_v20, %v2537_v19  ;;  %v3000_v30 = vld [vmem:[%s4638_s1 + $0x100] sm:$0xf0]  ;;  %v2498_v33 = vor.u32 %v3067_v23, %v2495_v25  ;;  %v3058_v35 = vld [vmem:[%s4638_s1 + $0x2d4] sm:$0xf] }
  0x25   :  { %1446 = vmatpush.bf16.msrb.mxu1 %v2930_v40  ;;  %1412 = vmatmul.bf16.vlgmr.msra.gmra.mxu2 %v3506_v1  ;;  %v2213_v29 = vld [vmem:[%s4638_s1 + $0xe0] sm:$0xf]  ;;  %v3072_v32 = vld [vmem:[%s4638_s1 + $0x340] sm:$0xf0]  ;;  %v2786_v34 = vor.u32 %v3139_v26, %v2783_v27  ;;  %v2459_v37 = vld [vmem:[%s4638_s1 + $0x2f4] sm:$0xf0] }
  0x26   :  { %1460 = vmatpush.bf16.msrb.mxu2 %v2358_v42  ;;  %1426 = vmatmul.bf16.vlgmr.msra.gmra.mxu3 %v3529_v12  ;;  %v2501_v31 = vld [vmem:[%s4638_s1 + $0x320] sm:$0xf]  ;;  %v2214_v36 = vor.u32 %v3000_v30, %v2213_v29  ;;  %v3130_v38 = vld [vmem:[%s4638_s1 + $0x514] sm:$0xf]  ;;  %v2747_v39 = vld [vmem:[%s4638_s1 + $0x534] sm:$0xf0]  ;;  %v2462_v45 = vor.u32 %v3058_v35, %v2459_v37 }
  0x27   :  { %1474 = vmatpush.bf16.msrb.mxu3 %v2646_v47  ;;  %v2502_v40 = vor.u32 %v3072_v32, %v2501_v31  ;;  %v2177_v41 = vld [vmem:[%s4638_s1 + $0x98] sm:$0xf]  ;;  %v2991_v42 = vld [vmem:[%s4638_s1 + $0xb8] sm:$0xf0]  ;;  %v2750_v46 = vor.u32 %v3130_v38, %v2747_v39  ;;  %v3049_v47 = vld [vmem:[%s4638_s1 + $0x28c] sm:$0xf] }
  0x28   :  { %1433 = vmatpush.bf16.msrb.mxu0 %v2606_v52  ;;  %v2465_v43 = vld [vmem:[%s4638_s1 + $0x2d8] sm:$0xf]  ;;  %v3063_v44 = vld [vmem:[%s4638_s1 + $0x2f8] sm:$0xf0]  ;;  %v2178_v48 = vor.u32 %v2991_v42, %v2177_v41  ;;  %v2423_v49 = vld [vmem:[%s4638_s1 + $0x2ac] sm:$0xf0] }
  0x29   :  { %1447 = vmatpush.bf16.msrb.mxu1 %v2894_v53  ;;  %v3121_v50 = vld [vmem:[%s4638_s1 + $0x4cc] sm:$0xf]  ;;  %v2711_v51 = vld [vmem:[%s4638_s1 + $0x4ec] sm:$0xf0]  ;;  %v2466_v52 = vor.u32 %v3063_v44, %v2465_v43  ;;  %v2982_v54 = vld [vmem:[%s4638_s1 + $0x70] sm:$0xf0] }
  0x2a   :  { %1461 = vmatpush.bf16.msrb.mxu2 %v2322_v57  ;;  %v2141_v53 = vld [vmem:[%s4638_s1 + $0x50] sm:$0xf]  ;;  %v3054_v56 = vld [vmem:[%s4638_s1 + $0x2b0] sm:$0xf0]  ;;  %v2426_v57 = vor.u32 %v3049_v47, %v2423_v49  ;;  %v2714_v58 = vor.u32 %v3121_v50, %v2711_v51  ;;  %v3040_v59 = vld [vmem:[%s4638_s1 + $0x244] sm:$0xf] }
  0x2b   :  { %1475 = vmatpush.bf16.msrb.mxu3 %v2610_v61  ;;  %v2429_v55 = vld [vmem:[%s4638_s1 + $0x290] sm:$0xf]  ;;  %v2387_v60 = vld [vmem:[%s4638_s1 + $0x264] sm:$0xf0]  ;;  %v3112_v61 = vld [vmem:[%s4638_s1 + $0x484] sm:$0xf]  ;;  %v2142_v62 = vor.u32 %v2982_v54, %v2141_v53 }
  0x2c   :  { %1434 = vmatpush.bf16.msrb.mxu0 %v2570_v5  ;;  %v2675_v63 = vld [vmem:[%s4638_s1 + $0x4a4] sm:$0xf0]  ;;  %v2973_v2 = vld [vmem:[%s4638_s1 + $0x28] sm:$0xf0]  ;;  %v2430_v3 = vor.u32 %v3054_v56, %v2429_v55  ;;  %v2933_v4 = vld [vmem:[%s4638_s1 + $0x680] sm:$0xf] }
  0x2d   :  { %1448 = vmatpush.bf16.msrb.mxu1 %v2858_v6  ;;  %v2105_v0 = vld [vmem:[%s4638_s1 + $0x8] sm:$0xf]  ;;  %v3180_v5 = vld [vmem:[%s4638_s1 + $0x6a0] sm:$0xf0]  ;;  %v2678_v11 = vor.u32 %v3112_v61, %v2675_v63  ;;  %v3045_v14 = vld [vmem:[%s4638_s1 + $0x268] sm:$0xf0] }
  0x2e   :  { %1462 = vmatpush.bf16.msrb.mxu2 %v2286_v10  ;;  %v3032_v6 = vld [vmem:[%s4638_s1 + $0x204] sm:$0xf]  ;;  %v2359_v7 = vld [vmem:[%s4638_s1 + $0x224] sm:$0xf0]  ;;  %v2390_v10 = vor.u32 %v3040_v59, %v2387_v60  ;;  %v2934_v16 = vor.u32 %v3180_v5, %v2933_v4  ;;  %v3171_v23 = vld [vmem:[%s4638_s1 + $0x658] sm:$0xf0] }
  0x2f   :  { %1476 = vmatpush.bf16.msrb.mxu3 %v2574_v15  ;;  %v3104_v8 = vld [vmem:[%s4638_s1 + $0x444] sm:$0xf]  ;;  %v2647_v9 = vld [vmem:[%s4638_s1 + $0x464] sm:$0xf0]  ;;  %v2106_v15 = vor.u32 %v2973_v2, %v2105_v0  ;;  %v2362_v20 = vor.u32 %v3032_v6, %v2359_v7  ;;  %v2323_v26 = vld [vmem:[%s4638_s1 + $0x1dc] sm:$0xf0] }
  0x30   :  { %1435 = vmatpush.bf16.msrb.mxu0 %v2534_v21  ;;  %v2393_v13 = vld [vmem:[%s4638_s1 + $0x248] sm:$0xf]  ;;  %v3176_v17 = vld [vmem:[%s4638_s1 + $0x684] sm:$0xf]  ;;  %v2650_v21 = vor.u32 %v3104_v8, %v2647_v9  ;;  %v3095_v27 = vld [vmem:[%s4638_s1 + $0x3fc] sm:$0xf] }
  0x31   :  { %1449 = vmatpush.bf16.msrb.mxu1 %v2822_v22  ;;  %v2935_v19 = vld [vmem:[%s4638_s1 + $0x6a4] sm:$0xf0]  ;;  %v2897_v22 = vld [vmem:[%s4638_s1 + $0x638] sm:$0xf]  ;;  %v2394_v25 = vor.u32 %v3045_v14, %v2393_v13  ;;  %v3167_v31 = vld [vmem:[%s4638_s1 + $0x63c] sm:$0xf] }
  0x32   :  { %1463 = vmatpush.bf16.msrb.mxu2 %v2250_v24  ;;  %v3023_v24 = vld [vmem:[%s4638_s1 + $0x1bc] sm:$0xf]  ;;  %v2938_v29 = vor.u32 %v3176_v17, %v2935_v19  ;;  %v2898_v30 = vor.u32 %v3171_v23, %v2897_v22  ;;  %v2899_v32 = vld [vmem:[%s4638_s1 + $0x65c] sm:$0xf0]  ;;  %v2861_v35 = vld [vmem:[%s4638_s1 + $0x5f0] sm:$0xf] }
  0x33   :  { %1477 = vmatpush.bf16.msrb.mxu3 %v2538_v28  ;;  %v2611_v28 = vld [vmem:[%s4638_s1 + $0x41c] sm:$0xf0]  ;;  %v3014_v37 = vld [vmem:[%s4638_s1 + $0x174] sm:$0xf]  ;;  %v2287_v38 = vld [vmem:[%s4638_s1 + $0x194] sm:$0xf0]  ;;  %v2902_v41 = vor.u32 %v3167_v31, %v2899_v32 }
  0x34   :  { %1436 = vmatpush.bf16.msrb.mxu0 %v2498_v33  ;;  %v2326_v33 = vor.u32 %v3023_v24, %v2323_v26  ;;  %v3086_v39 = vld [vmem:[%s4638_s1 + $0x3b4] sm:$0xf]  ;;  %v2863_v44 = vld [vmem:[%s4638_s1 + $0x614] sm:$0xf0]  ;;  %v2825_v47 = vld [vmem:[%s4638_s1 + $0x5a8] sm:$0xf] }
  0x35   :  { %1450 = vmatpush.bf16.msrb.mxu1 %v2786_v34  ;;  %v2614_v34 = vor.u32 %v3095_v27, %v2611_v28  ;;  %v3158_v43 = vld [vmem:[%s4638_s1 + $0x5f4] sm:$0xf]  ;;  %v3005_v49 = vld [vmem:[%s4638_s1 + $0x12c] sm:$0xf]  ;;  %v2251_v50 = vld [vmem:[%s4638_s1 + $0x14c] sm:$0xf0] }
  0x36   :  { %1464 = vmatpush.bf16.msrb.mxu2 %v2214_v36  ;;  %v3162_v36 = vld [vmem:[%s4638_s1 + $0x610] sm:$0xf0]  ;;  %v3077_v51 = vld [vmem:[%s4638_s1 + $0x36c] sm:$0xf]  ;;  %v2866_v53 = vor.u32 %v3158_v43, %v2863_v44  ;;  %v2827_v56 = vld [vmem:[%s4638_s1 + $0x5cc] sm:$0xf0] }
  0x37   :  { %1478 = vmatpush.bf16.msrb.mxu3 %v2502_v40  ;;  %v2575_v40 = vld [vmem:[%s4638_s1 + $0x3d4] sm:$0xf0]  ;;  %v2862_v42 = vor.u32 %v3162_v36, %v2861_v35  ;;  %v3149_v55 = vld [vmem:[%s4638_s1 + $0x5ac] sm:$0xf]  ;;  %v2789_v59 = vld [vmem:[%s4638_s1 + $0x560] sm:$0xf] }
  0x38   :  { %1437 = vmatpush.bf16.msrb.mxu0 %v2462_v45  ;;  %v2290_v45 = vor.u32 %v3014_v37, %v2287_v38  ;;  %v3144_v60 = vld [vmem:[%s4638_s1 + $0x580] sm:$0xf0]  ;;  %v2503_v0 = vld [vmem:[%s4638_s1 + $0x344] sm:$0xf0]  ;;  %v2830_v2 = vor.u32 %v3149_v55, %v2827_v56  ;;  %v2753_v8 = vld [vmem:[%s4638_s1 + $0x518] sm:$0xf] }
  0x39   :  { %1451 = vmatpush.bf16.msrb.mxu1 %v2750_v46  ;;  %v2578_v46 = vor.u32 %v3086_v39, %v2575_v40  ;;  %v2996_v61 = vld [vmem:[%s4638_s1 + $0xe4] sm:$0xf]  ;;  %v2791_v5 = vld [vmem:[%s4638_s1 + $0x584] sm:$0xf0]  ;;  %v3135_v9 = vld [vmem:[%s4638_s1 + $0x538] sm:$0xf0] }
  0x3a   :  { %1465 = vmatpush.bf16.msrb.mxu2 %v2178_v48  ;;  %v3153_v48 = vld [vmem:[%s4638_s1 + $0x5c8] sm:$0xf0]  ;;  %v3068_v63 = vld [vmem:[%s4638_s1 + $0x324] sm:$0xf]  ;;  %v3059_v13 = vld [vmem:[%s4638_s1 + $0x2dc] sm:$0xf] }
  0x3b   :  { %1479 = vmatpush.bf16.msrb.mxu3 %v2466_v52  ;;  %v2539_v52 = vld [vmem:[%s4638_s1 + $0x38c] sm:$0xf0]  ;;  %v2826_v54 = vor.u32 %v3153_v48, %v2825_v47  ;;  %v3140_v4 = vld [vmem:[%s4638_s1 + $0x564] sm:$0xf]  ;;  %v2506_v7 = vor.u32 %v3068_v63, %v2503_v0  ;;  %v2467_v14 = vld [vmem:[%s4638_s1 + $0x2fc] sm:$0xf0] }
  0x3c   :  { %1438 = vmatpush.bf16.msrb.mxu0 %v2426_v57  ;;  %v2254_v57 = vor.u32 %v3005_v49, %v2251_v50  ;;  %v3131_v17 = vld [vmem:[%s4638_s1 + $0x51c] sm:$0xf]  ;;  %v2755_v19 = vld [vmem:[%s4638_s1 + $0x53c] sm:$0xf0]  ;;  %v2717_v22 = vld [vmem:[%s4638_s1 + $0x4d0] sm:$0xf] }
  0x3d   :  { %1452 = vmatpush.bf16.msrb.mxu1 %v2714_v58  ;;  %v2542_v58 = vor.u32 %v3077_v51, %v2539_v52  ;;  %v3126_v23 = vld [vmem:[%s4638_s1 + $0x4f0] sm:$0xf0]  ;;  %v2431_v27 = vld [vmem:[%s4638_s1 + $0x2b4] sm:$0xf0]  ;;  %v2758_v28 = vor.u32 %v3131_v17, %v2755_v19  ;;  %v2681_v32 = vld [vmem:[%s4638_s1 + $0x488] sm:$0xf] }
  0x3e   :  { %1466 = vmatpush.bf16.msrb.mxu2 %v2142_v62  ;;  %v2215_v62 = vld [vmem:[%s4638_s1 + $0x104] sm:$0xf0]  ;;  %v2978_v24 = vld [vmem:[%s4638_s1 + $0x54] sm:$0xf]  ;;  %v2718_v31 = vor.u32 %v3126_v23, %v2717_v22  ;;  %v2107_v37 = vld [vmem:[%s4638_s1 + $0x2c] sm:$0xf0] }
  0x3f   :  { %1480 = vmatpush.bf16.msrb.mxu3 %v2430_v3  ;;  %v2790_v3 = vor.u32 %v3144_v60, %v2789_v59  ;;  %v2218_v6 = vor.u32 %v2996_v61, %v2215_v62  ;;  %v3050_v26 = vld [vmem:[%s4638_s1 + $0x294] sm:$0xf]  ;;  %v3041_v38 = vld [vmem:[%s4638_s1 + $0x24c] sm:$0xf]  ;;  %v2395_v39 = vld [vmem:[%s4638_s1 + $0x26c] sm:$0xf0] }
  0x40   :  { %1439 = vmatpush.bf16.msrb.mxu0 %v2390_v10  ;;  %v2987_v10 = vld [vmem:[%s4638_s1 + $0x9c] sm:$0xf]  ;;  %v2434_v36 = vor.u32 %v3050_v26, %v2431_v27  ;;  %v2365_v40 = vld [vmem:[%s4638_s1 + $0x208] sm:$0xf] }
  0x41   :  { %1453 = vmatpush.bf16.msrb.mxu1 %v2678_v11  ;;  %v2179_v11 = vld [vmem:[%s4638_s1 + $0xbc] sm:$0xf0] }
  0x42   :  { %1467 = vmatpush.bf16.msrb.mxu2 %v2106_v15  ;;  %v2794_v15 = vor.u32 %v3140_v4, %v2791_v5 }
  0x43   :  { %1481 = vmatpush.bf16.msrb.mxu3 %v2394_v25  ;;  %1440 = vmatmul.bf16.vlgmr.msrb.gmra.mxu0 %v3544_v18  ;;  %v2143_v25 = vld [vmem:[%s4638_s1 + $0x74] sm:$0xf0] }
  0x44   :  { %1488 = vmatpush.bf16.msra.mxu0 %v2934_v16  ;;  %1454 = vmatmul.bf16.vlgmr.msrb.gmra.mxu1 %v3506_v1  ;;  %v2754_v16 = vor.u32 %v3135_v9, %v2753_v8  ;;  %v2146_v35 = vor.u32 %v2978_v24, %v2143_v25 }
  0x45   :  { %1502 = vmatpush.bf16.msra.mxu1 %v2362_v20  ;;  %1468 = vmatmul.bf16.vlgmr.msrb.gmra.mxu2 %v3529_v12  ;;  %v2182_v20 = vor.u32 %v2987_v10, %v2179_v11 }
  0x46   :  { %1516 = vmatpush.bf16.msra.mxu2 %v2650_v21  ;;  %1482 = vmatmul.bf16.vlgmr.msrb.gmra.mxu3 %v3544_v18  ;;  %v2470_v21 = vor.u32 %v3059_v13, %v2467_v14 }
  0x47   :  { %1530 = vmatpush.bf16.msra.mxu3 %v2938_v29  ;;  %v3122_v29 = vld [vmem:[%s4638_s1 + $0x4d4] sm:$0xf] }
  0x48   :  { %1489 = vmatpush.bf16.msra.mxu0 %v2898_v30  ;;  %v2719_v30 = vld [vmem:[%s4638_s1 + $0x4f4] sm:$0xf0] }
  0x49   :  { %1503 = vmatpush.bf16.msra.mxu1 %v2326_v33  ;;  %v3117_v33 = vld [vmem:[%s4638_s1 + $0x4a8] sm:$0xf0] }
  0x4a   :  { %1517 = vmatpush.bf16.msra.mxu2 %v2614_v34  ;;  %v2969_v34 = vld [vmem:[%s4638_s1 + $0xc] sm:$0xf] }
  0x4b   :  { %1531 = vmatpush.bf16.msra.mxu3 %v2902_v41  ;;  %v3037_v41 = vld [vmem:[%s4638_s1 + $0x228] sm:$0xf0] }
  0x4c   :  { %1490 = vmatpush.bf16.msra.mxu0 %v2862_v42 }
  0x4d   :  { %1504 = vmatpush.bf16.msra.mxu1 %v2290_v45 }
  0x4e   :  { %1518 = vmatpush.bf16.msra.mxu2 %v2578_v46 }
  0x4f   :  { %1532 = vmatpush.bf16.msra.mxu3 %v2866_v53 }
  0x50   :  { %1491 = vmatpush.bf16.msra.mxu0 %v2826_v54 }
  0x51   :  { %1505 = vmatpush.bf16.msra.mxu1 %v2254_v57 }
  0x52   :  { %1519 = vmatpush.bf16.msra.mxu2 %v2542_v58 }
  0x53   :  { %1533 = vmatpush.bf16.msra.mxu3 %v2830_v2 }
  0x54   :  { %1492 = vmatpush.bf16.msra.mxu0 %v2790_v3 }
  0x55   :  { %1506 = vmatpush.bf16.msra.mxu1 %v2218_v6 }
  0x56   :  { %1520 = vmatpush.bf16.msra.mxu2 %v2506_v7 }
  0x57   :  { %1534 = vmatpush.bf16.msra.mxu3 %v2794_v15 }
  0x58   :  { %1493 = vmatpush.bf16.msra.mxu0 %v2754_v16 }
  0x59   :  { %1507 = vmatpush.bf16.msra.mxu1 %v2182_v20 }
  0x5a   :  { %1521 = vmatpush.bf16.msra.mxu2 %v2470_v21 }
  0x5b   :  { %7 = vsyncpa [#allocation3], 0  ;;  %1535 = vmatpush.bf16.msra.mxu3 %v2758_v28  ;;  %v2722_v42 = vor.u32 %v3122_v29, %v2719_v30  ;;  %v2653_v43 = vld [vmem:[%s4638_s1 + $0x448] sm:$0xf]  ;;  %v3109_v44 = vld [vmem:[%s4638_s1 + $0x468] sm:$0xf0]  ;;  %v2682_v46 = vor.u32 %v3117_v33, %v2681_v32  ;;  %v2110_v50 = vor.u32 %v2969_v34, %v2107_v37  ;;  %v2398_v51 = vor.u32 %v3041_v38, %v2395_v39 }
  0x5c   :  { %v2941_v45 = vld [vmem:[%s4638_s1 + $0x688] sm:$0xf]  ;;  %1494 = vmatpush.bf16.msra.mxu0 %v2718_v31  ;;  %v3181_v47 = vld [vmem:[%s4638_s1 + $0x6a8] sm:$0xf0]  ;;  %v2683_v49 = vld [vmem:[%s4638_s1 + $0x4ac] sm:$0xf0]  ;;  %v2366_v54 = vor.u32 %v3037_v41, %v2365_v40  ;;  %v2654_v55 = vor.u32 %v3109_v44, %v2653_v43 }
  0x5d   :  { %v3113_v48 = vld [vmem:[%s4638_s1 + $0x48c] sm:$0xf]  ;;  %1508 = vmatpush.bf16.msra.mxu1 %v2146_v35  ;;  %v2367_v53 = vld [vmem:[%s4638_s1 + $0x22c] sm:$0xf0]  ;;  %v2942_v56 = vor.u32 %v3181_v47, %v2941_v45  ;;  %v2329_v58 = vld [vmem:[%s4638_s1 + $0x1c0] sm:$0xf] }
  0x5e   :  { %1522 = vmatpush.bf16.msra.mxu2 %v2434_v36  ;;  %v3033_v52 = vld [vmem:[%s4638_s1 + $0x20c] sm:$0xf]  ;;  %v2686_v57 = vor.u32 %v3113_v48, %v2683_v49  ;;  %v3028_v59 = vld [vmem:[%s4638_s1 + $0x1e0] sm:$0xf0]  ;;  %v2617_v60 = vld [vmem:[%s4638_s1 + $0x400] sm:$0xf] }
  0x5f   :  { %1536 = vmatpush.bf16.msra.mxu3 %v2722_v42  ;;  %v2370_v61 = vor.u32 %v3033_v52, %v2367_v53  ;;  %v3100_v62 = vld [vmem:[%s4638_s1 + $0x420] sm:$0xf0]  ;;  %v2905_v63 = vld [vmem:[%s4638_s1 + $0x640] sm:$0xf]  ;;  %v2331_v3 = vld [vmem:[%s4638_s1 + $0x1e4] sm:$0xf0]  ;;  %v2330_v4 = vor.u32 %v3028_v59, %v2329_v58 }
  0x60   :  { %1495 = vmatpush.bf16.msra.mxu0 %v2682_v46  ;;  %v3172_v0 = vld [vmem:[%s4638_s1 + $0x660] sm:$0xf0]  ;;  %v2618_v5 = vor.u32 %v3100_v62, %v2617_v60  ;;  %v2293_v7 = vld [vmem:[%s4638_s1 + $0x178] sm:$0xf]  ;;  %v3019_v8 = vld [vmem:[%s4638_s1 + $0x198] sm:$0xf0] }
  0x61   :  { %1509 = vmatpush.bf16.msra.mxu1 %v2110_v50  ;;  %v3024_v2 = vld [vmem:[%s4638_s1 + $0x1c4] sm:$0xf]  ;;  %v2906_v6 = vor.u32 %v3172_v0, %v2905_v63  ;;  %v2581_v9 = vld [vmem:[%s4638_s1 + $0x3b8] sm:$0xf]  ;;  %v3091_v11 = vld [vmem:[%s4638_s1 + $0x3d8] sm:$0xf0]  ;;  %v2294_v17 = vor.u32 %v3019_v8, %v2293_v7 }
  0x62   :  { %1523 = vmatpush.bf16.msra.mxu2 %v2398_v51  ;;  %v2334_v10 = vor.u32 %v3024_v2, %v2331_v3  ;;  %v2869_v13 = vld [vmem:[%s4638_s1 + $0x5f8] sm:$0xf]  ;;  %v3163_v14 = vld [vmem:[%s4638_s1 + $0x618] sm:$0xf0]  ;;  %v2295_v16 = vld [vmem:[%s4638_s1 + $0x19c] sm:$0xf0]  ;;  %v2582_v19 = vor.u32 %v3091_v11, %v2581_v9 }
  0x63   :  { %1537 = vmatpush.bf16.msra.mxu3 %v2686_v57  ;;  %v3015_v15 = vld [vmem:[%s4638_s1 + $0x17c] sm:$0xf]  ;;  %1496 = vmatmul.bf16.vlgmr.msra.gmra.mxu0 %v3506_v1  ;;  %v2870_v20 = vor.u32 %v3163_v14, %v2869_v13  ;;  %v2257_v21 = vld [vmem:[%s4638_s1 + $0x130] sm:$0xf]  ;;  %v3010_v22 = vld [vmem:[%s4638_s1 + $0x150] sm:$0xf0] }
  0x64   :  { %1544 = vmatpush.bf16.msrb.mxu0 %v2366_v54  ;;  %1510 = vmatmul.bf16.vlgmr.msra.gmra.mxu1 %v3529_v12  ;;  %v2545_v23 = vld [vmem:[%s4638_s1 + $0x370] sm:$0xf]  ;;  %v2298_v24 = vor.u32 %v3015_v15, %v2295_v16  ;;  %v3082_v25 = vld [vmem:[%s4638_s1 + $0x390] sm:$0xf0]  ;;  %v2259_v29 = vld [vmem:[%s4638_s1 + $0x154] sm:$0xf0]  ;;  %v2258_v30 = vor.u32 %v3010_v22, %v2257_v21 }
  0x65   :  { %1558 = vmatpush.bf16.msrb.mxu1 %v2654_v55  ;;  %1524 = vmatmul.bf16.vlgmr.msra.gmra.mxu2 %v3544_v18  ;;  %v2833_v26 = vld [vmem:[%s4638_s1 + $0x5b0] sm:$0xf]  ;;  %v3154_v27 = vld [vmem:[%s4638_s1 + $0x5d0] sm:$0xf0]  ;;  %v2546_v31 = vor.u32 %v3082_v25, %v2545_v23  ;;  %v2221_v33 = vld [vmem:[%s4638_s1 + $0xe8] sm:$0xf] }
  0x66   :  { %1572 = vmatpush.bf16.msrb.mxu2 %v2942_v56  ;;  %1538 = vmatmul.bf16.vlgmr.msra.gmra.mxu3 %v3506_v1  ;;  %v3006_v28 = vld [vmem:[%s4638_s1 + $0x134] sm:$0xf]  ;;  %v2834_v32 = vor.u32 %v3154_v27, %v2833_v26  ;;  %v3001_v34 = vld [vmem:[%s4638_s1 + $0x108] sm:$0xf0]  ;;  %v2509_v35 = vld [vmem:[%s4638_s1 + $0x328] sm:$0xf] }
  0x67   :  { %1586 = vmatpush.bf16.msrb.mxu3 %v2370_v61  ;;  %v2262_v36 = vor.u32 %v3006_v28, %v2259_v29  ;;  %v3073_v37 = vld [vmem:[%s4638_s1 + $0x348] sm:$0xf0]  ;;  %v2797_v38 = vld [vmem:[%s4638_s1 + $0x568] sm:$0xf]  ;;  %v2223_v41 = vld [vmem:[%s4638_s1 + $0x10c] sm:$0xf0]  ;;  %v2222_v42 = vor.u32 %v3001_v34, %v2221_v33 }
  0x68   :  { %1545 = vmatpush.bf16.msrb.mxu0 %v2330_v4  ;;  %v3145_v39 = vld [vmem:[%s4638_s1 + $0x588] sm:$0xf0]  ;;  %v2510_v43 = vor.u32 %v3073_v37, %v2509_v35  ;;  %v2185_v45 = vld [vmem:[%s4638_s1 + $0xa0] sm:$0xf]  ;;  %v2992_v46 = vld [vmem:[%s4638_s1 + $0xc0] sm:$0xf0] }
  0x69   :  { %1559 = vmatpush.bf16.msrb.mxu1 %v2618_v5  ;;  %v2997_v40 = vld [vmem:[%s4638_s1 + $0xec] sm:$0xf]  ;;  %v2798_v44 = vor.u32 %v3145_v39, %v2797_v38  ;;  %v2473_v47 = vld [vmem:[%s4638_s1 + $0x2e0] sm:$0xf]  ;;  %v3064_v49 = vld [vmem:[%s4638_s1 + $0x300] sm:$0xf0]  ;;  %v2186_v54 = vor.u32 %v2992_v46, %v2185_v45 }
  0x6a   :  { %1573 = vmatpush.bf16.msrb.mxu2 %v2906_v6  ;;  %v2226_v48 = vor.u32 %v2997_v40, %v2223_v41  ;;  %v2761_v50 = vld [vmem:[%s4638_s1 + $0x520] sm:$0xf]  ;;  %v3136_v51 = vld [vmem:[%s4638_s1 + $0x540] sm:$0xf0]  ;;  %v2187_v53 = vld [vmem:[%s4638_s1 + $0xc4] sm:$0xf0]  ;;  %v2474_v55 = vor.u32 %v3064_v49, %v2473_v47 }
  0x6b   :  { %1587 = vmatpush.bf16.msrb.mxu3 %v2334_v10  ;;  %v2988_v52 = vld [vmem:[%s4638_s1 + $0xa4] sm:$0xf]  ;;  %v2762_v56 = vor.u32 %v3136_v51, %v2761_v50  ;;  %v2149_v57 = vld [vmem:[%s4638_s1 + $0x58] sm:$0xf]  ;;  %v2983_v58 = vld [vmem:[%s4638_s1 + $0x78] sm:$0xf0] }
  0x6c   :  { %1546 = vmatpush.bf16.msrb.mxu0 %v2294_v17  ;;  %v2437_v59 = vld [vmem:[%s4638_s1 + $0x298] sm:$0xf]  ;;  %v2190_v60 = vor.u32 %v2988_v52, %v2187_v53  ;;  %v3055_v61 = vld [vmem:[%s4638_s1 + $0x2b8] sm:$0xf0]  ;;  %v2151_v2 = vld [vmem:[%s4638_s1 + $0x7c] sm:$0xf0]  ;;  %v2150_v3 = vor.u32 %v2983_v58, %v2149_v57 }
  0x6d   :  { %1560 = vmatpush.bf16.msrb.mxu1 %v2582_v19  ;;  %v2725_v62 = vld [vmem:[%s4638_s1 + $0x4d8] sm:$0xf]  ;;  %v3127_v63 = vld [vmem:[%s4638_s1 + $0x4f8] sm:$0xf0]  ;;  %v2113_v4 = vld [vmem:[%s4638_s1 + $0x10] sm:$0xf]  ;;  %v2438_v6 = vor.u32 %v3055_v61, %v2437_v59 }
  0x6e   :  { %1574 = vmatpush.bf16.msrb.mxu2 %v2870_v20  ;;  %v2979_v0 = vld [vmem:[%s4638_s1 + $0x5c] sm:$0xf]  ;;  %v2974_v5 = vld [vmem:[%s4638_s1 + $0x30] sm:$0xf0]  ;;  %v2726_v7 = vor.u32 %v3127_v63, %v2725_v62  ;;  %v2401_v8 = vld [vmem:[%s4638_s1 + $0x250] sm:$0xf] }
  0x6f   :  { %1588 = vmatpush.bf16.msrb.mxu3 %v2298_v24  ;;  %v3046_v9 = vld [vmem:[%s4638_s1 + $0x270] sm:$0xf0]  ;;  %v2689_v10 = vld [vmem:[%s4638_s1 + $0x490] sm:$0xf]  ;;  %v2154_v11 = vor.u32 %v2979_v0, %v2151_v2  ;;  %v3105_v14 = vld [vmem:[%s4638_s1 + $0x44c] sm:$0xf]  ;;  %v2114_v20 = vor.u32 %v2974_v5, %v2113_v4 }
  0x70   :  { %1547 = vmatpush.bf16.msrb.mxu0 %v2258_v30  ;;  %v3118_v13 = vld [vmem:[%s4638_s1 + $0x4b0] sm:$0xf0]  ;;  %v2655_v15 = vld [vmem:[%s4638_s1 + $0x46c] sm:$0xf0]  ;;  %v3177_v16 = vld [vmem:[%s4638_s1 + $0x68c] sm:$0xf]  ;;  %v2402_v24 = vor.u32 %v3046_v9, %v2401_v8 }
  0x71   :  { %1561 = vmatpush.bf16.msrb.mxu1 %v2546_v31  ;;  %v2943_v17 = vld [vmem:[%s4638_s1 + $0x6ac] sm:$0xf0]  ;;  %v3038_v21 = vld [vmem:[%s4638_s1 + $0x230] sm:$0xf0]  ;;  %v2115_v23 = vld [vmem:[%s4638_s1 + $0x34] sm:$0xf0]  ;;  %v2690_v25 = vor.u32 %v3118_v13, %v2689_v10  ;;  %v2658_v28 = vor.u32 %v3105_v14, %v2655_v15 }
  0x72   :  { %1575 = vmatpush.bf16.msrb.mxu2 %v2834_v32  ;;  %v2373_v19 = vld [vmem:[%s4638_s1 + $0x210] sm:$0xf]  ;;  %v2970_v22 = vld [vmem:[%s4638_s1 + $0x14] sm:$0xf]  ;;  %v2946_v29 = vor.u32 %v3177_v16, %v2943_v17  ;;  %v3096_v30 = vld [vmem:[%s4638_s1 + $0x404] sm:$0xf] }
  0x73   :  { %1589 = vmatpush.bf16.msrb.mxu3 %v2262_v36  ;;  %v2661_v26 = vld [vmem:[%s4638_s1 + $0x450] sm:$0xf]  ;;  %v3110_v27 = vld [vmem:[%s4638_s1 + $0x470] sm:$0xf0]  ;;  %v2374_v31 = vor.u32 %v3038_v21, %v2373_v19  ;;  %v2118_v32 = vor.u32 %v2970_v22, %v2115_v23  ;;  %v2619_v33 = vld [vmem:[%s4638_s1 + $0x424] sm:$0xf0] }
  0x74   :  { %1548 = vmatpush.bf16.msrb.mxu0 %v2222_v42  ;;  %v3168_v34 = vld [vmem:[%s4638_s1 + $0x644] sm:$0xf]  ;;  %v2907_v35 = vld [vmem:[%s4638_s1 + $0x664] sm:$0xf0]  ;;  %v2662_v36 = vor.u32 %v3110_v27, %v2661_v26  ;;  %v3029_v38 = vld [vmem:[%s4638_s1 + $0x1e8] sm:$0xf0]  ;;  %v2622_v41 = vor.u32 %v3096_v30, %v2619_v33 }
  0x75   :  { %1562 = vmatpush.bf16.msrb.mxu1 %v2510_v43  ;;  %v2337_v37 = vld [vmem:[%s4638_s1 + $0x1c8] sm:$0xf]  ;;  %v3101_v40 = vld [vmem:[%s4638_s1 + $0x428] sm:$0xf0]  ;;  %v2910_v42 = vor.u32 %v3168_v34, %v2907_v35  ;;  %v3087_v43 = vld [vmem:[%s4638_s1 + $0x3bc] sm:$0xf] }
  0x76   :  { %1576 = vmatpush.bf16.msrb.mxu2 %v2798_v44  ;;  %v2625_v39 = vld [vmem:[%s4638_s1 + $0x408] sm:$0xf]  ;;  %v2338_v44 = vor.u32 %v3029_v38, %v2337_v37  ;;  %v2583_v45 = vld [vmem:[%s4638_s1 + $0x3dc] sm:$0xf0]  ;;  %v3159_v46 = vld [vmem:[%s4638_s1 + $0x5fc] sm:$0xf] }
  0x77   :  { %1590 = vmatpush.bf16.msrb.mxu3 %v2226_v48  ;;  %v2871_v47 = vld [vmem:[%s4638_s1 + $0x61c] sm:$0xf0]  ;;  %v2626_v48 = vor.u32 %v3101_v40, %v2625_v39  ;;  %v3020_v50 = vld [vmem:[%s4638_s1 + $0x1a0] sm:$0xf0]  ;;  %v2586_v53 = vor.u32 %v3087_v43, %v2583_v45  ;;  %v2547_v57 = vld [vmem:[%s4638_s1 + $0x394] sm:$0xf0] }
  0x78   :  { %1549 = vmatpush.bf16.msrb.mxu0 %v2186_v54  ;;  %v2301_v49 = vld [vmem:[%s4638_s1 + $0x180] sm:$0xf]  ;;  %v3092_v52 = vld [vmem:[%s4638_s1 + $0x3e0] sm:$0xf0]  ;;  %v2874_v54 = vor.u32 %v3159_v46, %v2871_v47  ;;  %v3150_v58 = vld [vmem:[%s4638_s1 + $0x5b4] sm:$0xf] }
  0x79   :  { %1563 = vmatpush.bf16.msrb.mxu1 %v2474_v55  ;;  %v2589_v51 = vld [vmem:[%s4638_s1 + $0x3c0] sm:$0xf]  ;;  %v3078_v55 = vld [vmem:[%s4638_s1 + $0x374] sm:$0xf]  ;;  %v2835_v59 = vld [vmem:[%s4638_s1 + $0x5d4] sm:$0xf0] }
  0x7a   :  { %1577 = vmatpush.bf16.msrb.mxu2 %v2762_v56  ;;  %v2302_v56 = vor.u32 %v3020_v50, %v2301_v49  ;;  %v2265_v61 = vld [vmem:[%s4638_s1 + $0x138] sm:$0xf]  ;;  %v3011_v62 = vld [vmem:[%s4638_s1 + $0x158] sm:$0xf0]  ;;  %v2550_v2 = vor.u32 %v3078_v55, %v2547_v57  ;;  %v3069_v4 = vld [vmem:[%s4638_s1 + $0x32c] sm:$0xf] }
  0x7b   :  { %1591 = vmatpush.bf16.msrb.mxu3 %v2190_v60  ;;  %v2590_v60 = vor.u32 %v3092_v52, %v2589_v51  ;;  %v2553_v63 = vld [vmem:[%s4638_s1 + $0x378] sm:$0xf]  ;;  %v3083_v0 = vld [vmem:[%s4638_s1 + $0x398] sm:$0xf0]  ;;  %v2266_v5 = vor.u32 %v3011_v62, %v2265_v61  ;;  %v2799_v8 = vld [vmem:[%s4638_s1 + $0x58c] sm:$0xf0] }
  0x7c   :  { %1550 = vmatpush.bf16.msrb.mxu0 %v2150_v3  ;;  %v2838_v3 = vor.u32 %v3150_v58, %v2835_v59  ;;  %v2554_v9 = vor.u32 %v3083_v0, %v2553_v63  ;;  %v2229_v10 = vld [vmem:[%s4638_s1 + $0xf0] sm:$0xf]  ;;  %v3074_v14 = vld [vmem:[%s4638_s1 + $0x350] sm:$0xf0]  ;;  %v3060_v17 = vld [vmem:[%s4638_s1 + $0x2e4] sm:$0xf] }
  0x7d   :  { %1564 = vmatpush.bf16.msrb.mxu1 %v2438_v6  ;;  %v2511_v6 = vld [vmem:[%s4638_s1 + $0x34c] sm:$0xf0]  ;;  %v3132_v21 = vld [vmem:[%s4638_s1 + $0x524] sm:$0xf]  ;;  %v2763_v22 = vld [vmem:[%s4638_s1 + $0x544] sm:$0xf0] }
  0x7e   :  { %1578 = vmatpush.bf16.msrb.mxu2 %v2726_v7  ;;  %v3141_v7 = vld [vmem:[%s4638_s1 + $0x56c] sm:$0xf]  ;;  %v2517_v13 = vld [vmem:[%s4638_s1 + $0x330] sm:$0xf]  ;;  %v2514_v15 = vor.u32 %v3069_v4, %v2511_v6  ;;  %v2481_v26 = vld [vmem:[%s4638_s1 + $0x2e8] sm:$0xf] }
  0x7f   :  { %1592 = vmatpush.bf16.msrb.mxu3 %v2154_v11  ;;  %v3002_v11 = vld [vmem:[%s4638_s1 + $0x110] sm:$0xf0]  ;;  %v2802_v16 = vor.u32 %v3141_v7, %v2799_v8  ;;  %v2518_v23 = vor.u32 %v3074_v14, %v2517_v13  ;;  %v3065_v27 = vld [vmem:[%s4638_s1 + $0x308] sm:$0xf0]  ;;  %v3051_v30 = vld [vmem:[%s4638_s1 + $0x29c] sm:$0xf] }
  0x80   :  { %1551 = vmatpush.bf16.msrb.mxu0 %v2114_v20  ;;  %v2230_v19 = vor.u32 %v3002_v11, %v2229_v10  ;;  %v2475_v20 = vld [vmem:[%s4638_s1 + $0x304] sm:$0xf0]  ;;  %v3123_v33 = vld [vmem:[%s4638_s1 + $0x4dc] sm:$0xf]  ;;  %v2727_v34 = vld [vmem:[%s4638_s1 + $0x4fc] sm:$0xf0]  ;;  %v2482_v35 = vor.u32 %v3065_v27, %v2481_v26 }
  0x81   :  { %1565 = vmatpush.bf16.msrb.mxu1 %v2402_v24  ;;  %v2193_v24 = vld [vmem:[%s4638_s1 + $0xa8] sm:$0xf]  ;;  %v2984_v37 = vld [vmem:[%s4638_s1 + $0x80] sm:$0xf0]  ;;  %v2445_v38 = vld [vmem:[%s4638_s1 + $0x2a0] sm:$0xf] }
  0x82   :  { %1579 = vmatpush.bf16.msrb.mxu2 %v2690_v25  ;;  %v2993_v25 = vld [vmem:[%s4638_s1 + $0xc8] sm:$0xf0]  ;;  %v3056_v39 = vld [vmem:[%s4638_s1 + $0x2c0] sm:$0xf0]  ;;  %v2403_v43 = vld [vmem:[%s4638_s1 + $0x274] sm:$0xf0] }
  0x83   :  { %1593 = vmatpush.bf16.msrb.mxu3 %v2118_v32  ;;  %1552 = vmatmul.bf16.vlgmr.msrb.gmra.mxu0 %v3529_v12  ;;  %v2439_v32 = vld [vmem:[%s4638_s1 + $0x2bc] sm:$0xf0]  ;;  %v2691_v46 = vld [vmem:[%s4638_s1 + $0x4b4] sm:$0xf0]  ;;  %v2446_v49 = vor.u32 %v3056_v39, %v2445_v38  ;;  %v2949_v50 = vld [vmem:[%s4638_s1 + $0x690] sm:$0xf] }
  0x84   :  { %1600 = vmatpush.bf16.msra.mxu0 %v2658_v28  ;;  %1566 = vmatmul.bf16.vlgmr.msrb.gmra.mxu1 %v3544_v18  ;;  %v2478_v28 = vor.u32 %v3060_v17, %v2475_v20  ;;  %v2442_v40 = vor.u32 %v3051_v30, %v2439_v32  ;;  %v2121_v47 = vld [vmem:[%s4638_s1 + $0x18] sm:$0xf]  ;;  %v3182_v51 = vld [vmem:[%s4638_s1 + $0x6b0] sm:$0xf0]  ;;  %v3047_v55 = vld [vmem:[%s4638_s1 + $0x278] sm:$0xf0] }
  0x85   :  { %1614 = vmatpush.bf16.msra.mxu1 %v2946_v29  ;;  %1580 = vmatmul.bf16.vlgmr.msrb.gmra.mxu2 %v3506_v1  ;;  %v2766_v29 = vor.u32 %v3132_v21, %v2763_v22  ;;  %v3106_v52 = vld [vmem:[%s4638_s1 + $0x454] sm:$0xf]  ;;  %v2951_v61 = vld [vmem:[%s4638_s1 + $0x6b4] sm:$0xf0]  ;;  %v3173_v4 = vld [vmem:[%s4638_s1 + $0x668] sm:$0xf0] }
  0x86   :  { %1628 = vmatpush.bf16.msra.mxu2 %v2374_v31  ;;  %1594 = vmatmul.bf16.vlgmr.msrb.gmra.mxu3 %v3529_v12  ;;  %v2194_v31 = vor.u32 %v2993_v25, %v2193_v24  ;;  %v3178_v58 = vld [vmem:[%s4638_s1 + $0x694] sm:$0xf]  ;;  %v2375_v63 = vld [vmem:[%s4638_s1 + $0x234] sm:$0xf0]  ;;  %v2627_v6 = vld [vmem:[%s4638_s1 + $0x42c] sm:$0xf0] }
  0x87   :  { %1642 = vmatpush.bf16.msra.mxu3 %v2662_v36  ;;  %v2157_v36 = vld [vmem:[%s4638_s1 + $0x60] sm:$0xf]  ;;  %v3034_v62 = vld [vmem:[%s4638_s1 + $0x214] sm:$0xf]  ;;  %v2954_v7 = vor.u32 %v3178_v58, %v2951_v61  ;;  %v2915_v11 = vld [vmem:[%s4638_s1 + $0x66c] sm:$0xf0] }
  0x88   :  { %1601 = vmatpush.bf16.msra.mxu0 %v2622_v41  ;;  %v2730_v41 = vor.u32 %v3123_v33, %v2727_v34  ;;  %v2158_v45 = vor.u32 %v2984_v37, %v2157_v36  ;;  %v2378_v8 = vor.u32 %v3034_v62, %v2375_v63  ;;  %v3025_v13 = vld [vmem:[%s4638_s1 + $0x1cc] sm:$0xf]  ;;  %v2339_v14 = vld [vmem:[%s4638_s1 + $0x1ec] sm:$0xf0]  ;;  %v3164_v17 = vld [vmem:[%s4638_s1 + $0x620] sm:$0xf0] }
  0x89   :  { %1615 = vmatpush.bf16.msra.mxu1 %v2910_v42  ;;  %v3042_v42 = vld [vmem:[%s4638_s1 + $0x254] sm:$0xf]  ;;  %v2591_v20 = vld [vmem:[%s4638_s1 + $0x3e4] sm:$0xf0]  ;;  %v2342_v22 = vor.u32 %v3025_v13, %v2339_v14  ;;  %v3016_v26 = vld [vmem:[%s4638_s1 + $0x184] sm:$0xf] }
  0x8a   :  { %1629 = vmatpush.bf16.msra.mxu2 %v2338_v44  ;;  %v3114_v44 = vld [vmem:[%s4638_s1 + $0x494] sm:$0xf]  ;;  %v2879_v25 = vld [vmem:[%s4638_s1 + $0x624] sm:$0xf0]  ;;  %v3155_v30 = vld [vmem:[%s4638_s1 + $0x5d8] sm:$0xf0] }
  0x8b   :  { %1643 = vmatpush.bf16.msra.mxu3 %v2626_v48  ;;  %v2975_v48 = vld [vmem:[%s4638_s1 + $0x38] sm:$0xf0]  ;;  %v2694_v57 = vor.u32 %v3114_v44, %v2691_v46  ;;  %v2303_v27 = vld [vmem:[%s4638_s1 + $0x1a4] sm:$0xf0]  ;;  %v2555_v32 = vld [vmem:[%s4638_s1 + $0x39c] sm:$0xf0] }
  0x8c   :  { %1602 = vmatpush.bf16.msra.mxu0 %v2586_v53  ;;  %v2663_v53 = vld [vmem:[%s4638_s1 + $0x474] sm:$0xf0]  ;;  %v2122_v59 = vor.u32 %v2975_v48, %v2121_v47  ;;  %v2306_v34 = vor.u32 %v3016_v26, %v2303_v27  ;;  %v2843_v37 = vld [vmem:[%s4638_s1 + $0x5dc] sm:$0xf0]  ;;  %v3007_v38 = vld [vmem:[%s4638_s1 + $0x13c] sm:$0xf] }
  0x8d   :  { %1616 = vmatpush.bf16.msra.mxu1 %v2874_v54  ;;  %v2409_v54 = vld [vmem:[%s4638_s1 + $0x258] sm:$0xf]  ;;  %v2666_v0 = vor.u32 %v3106_v52, %v2663_v53  ;;  %v2267_v39 = vld [vmem:[%s4638_s1 + $0x15c] sm:$0xf0]  ;;  %v3142_v47 = vld [vmem:[%s4638_s1 + $0x574] sm:$0xf] }
  0x8e   :  { %1630 = vmatpush.bf16.msra.mxu2 %v2302_v56  ;;  %v2406_v56 = vor.u32 %v3042_v42, %v2403_v43  ;;  %v3146_v42 = vld [vmem:[%s4638_s1 + $0x590] sm:$0xf0]  ;;  %v2519_v44 = vld [vmem:[%s4638_s1 + $0x354] sm:$0xf0]  ;;  %v2270_v46 = vor.u32 %v3007_v38, %v2267_v39  ;;  %v2769_v53 = vld [vmem:[%s4638_s1 + $0x528] sm:$0xf] }
  0x8f   :  { %1644 = vmatpush.bf16.msra.mxu3 %v2590_v60  ;;  %v2950_v60 = vor.u32 %v3182_v51, %v2949_v50  ;;  %v3070_v43 = vld [vmem:[%s4638_s1 + $0x334] sm:$0xf]  ;;  %v2231_v51 = vld [vmem:[%s4638_s1 + $0x114] sm:$0xf0]  ;;  %v2771_v61 = vld [vmem:[%s4638_s1 + $0x54c] sm:$0xf0] }
  0x90   :  { %1603 = vmatpush.bf16.msra.mxu0 %v2550_v2  ;;  %v2410_v2 = vor.u32 %v3047_v55, %v2409_v54  ;;  %v2998_v50 = vld [vmem:[%s4638_s1 + $0xf4] sm:$0xf]  ;;  %v2522_v52 = vor.u32 %v3070_v43, %v2519_v44  ;;  %v3137_v54 = vld [vmem:[%s4638_s1 + $0x548] sm:$0xf0]  ;;  %v2195_v63 = vld [vmem:[%s4638_s1 + $0xcc] sm:$0xf0] }
  0x91   :  { %1617 = vmatpush.bf16.msra.mxu1 %v2838_v3  ;;  %v2913_v3 = vld [vmem:[%s4638_s1 + $0x648] sm:$0xf]  ;;  %v3061_v55 = vld [vmem:[%s4638_s1 + $0x2ec] sm:$0xf]  ;;  %v2234_v58 = vor.u32 %v2998_v50, %v2231_v51  ;;  %v2980_v13 = vld [vmem:[%s4638_s1 + $0x64] sm:$0xf] }
  0x92   :  { %1631 = vmatpush.bf16.msra.mxu2 %v2266_v5  ;;  %v3097_v5 = vld [vmem:[%s4638_s1 + $0x40c] sm:$0xf]  ;;  %v2914_v10 = vor.u32 %v3173_v4, %v2913_v3  ;;  %v3128_v3 = vld [vmem:[%s4638_s1 + $0x500] sm:$0xf0]  ;;  %v2159_v14 = vld [vmem:[%s4638_s1 + $0x84] sm:$0xf0] }
  0x93   :  { %1645 = vmatpush.bf16.msra.mxu3 %v2554_v9  ;;  %v3169_v9 = vld [vmem:[%s4638_s1 + $0x64c] sm:$0xf]  ;;  %v3052_v4 = vld [vmem:[%s4638_s1 + $0x2a4] sm:$0xf]  ;;  %v2957_v26 = vld [vmem:[%s4638_s1 + $0x698] sm:$0xf] }
  0x94   :  { %1604 = vmatpush.bf16.msra.mxu0 %v2514_v15  ;;  %v2630_v15 = vor.u32 %v3097_v5, %v2627_v6  ;;  %v2918_v21 = vor.u32 %v3169_v9, %v2915_v11  ;;  %v2989_v62 = vld [vmem:[%s4638_s1 + $0xac] sm:$0xf]  ;;  %v2447_v5 = vld [vmem:[%s4638_s1 + $0x2c4] sm:$0xf0]  ;;  %v3183_v27 = vld [vmem:[%s4638_s1 + $0x6b8] sm:$0xf0] }
  0x95   :  { %1618 = vmatpush.bf16.msra.mxu1 %v2802_v16  ;;  %v2877_v16 = vld [vmem:[%s4638_s1 + $0x600] sm:$0xf]  ;;  %v2345_v38 = vld [vmem:[%s4638_s1 + $0x1d0] sm:$0xf]  ;;  %v3030_v39 = vld [vmem:[%s4638_s1 + $0x1f0] sm:$0xf0] }
  0x96   :  { %1632 = vmatpush.bf16.msra.mxu2 %v2230_v19  ;;  %v3088_v19 = vld [vmem:[%s4638_s1 + $0x3c4] sm:$0xf]  ;;  %v2878_v24 = vor.u32 %v3164_v17, %v2877_v16  ;;  %v2697_v16 = vld [vmem:[%s4638_s1 + $0x498] sm:$0xf]  ;;  %v3119_v17 = vld [vmem:[%s4638_s1 + $0x4b8] sm:$0xf0] }
  0x97   :  { %1646 = vmatpush.bf16.msra.mxu3 %v2518_v23  ;;  %v3160_v23 = vld [vmem:[%s4638_s1 + $0x604] sm:$0xf]  ;;  %v3174_v43 = vld [vmem:[%s4638_s1 + $0x670] sm:$0xf0]  ;;  %vm1821_vm1 = vcmask 64512   ;;  %s2071_s24 = sshll.u32 %s4639_s2, 4  ;;  %s2072_s24 = int_to_ptr.hbm [resolvable:$true] %s2071_s24 }
  0x98   :  { %1605 = vmatpush.bf16.msra.mxu0 %v2478_v28  ;;  %v2594_v28 = vor.u32 %v3088_v19, %v2591_v20  ;;  %v2882_v33 = vor.u32 %v3160_v23, %v2879_v25  ;;  %v3043_v19 = vld [vmem:[%s4638_s1 + $0x25c] sm:$0xf]  ;;  %v2411_v20 = vld [vmem:[%s4638_s1 + $0x27c] sm:$0xf0]  ;;  %v2162_v25 = vor.u32 %v2980_v13, %v2159_v14  ;;  %v3102_v51 = vld [vmem:[%s4638_s1 + $0x430] sm:$0xf0] }
  0x99   :  { %1619 = vmatpush.bf16.msra.mxu1 %v2766_v29  ;;  %v2841_v29 = vld [vmem:[%s4638_s1 + $0x5b8] sm:$0xf]  ;;  %v3039_v23 = vld [vmem:[%s4638_s1 + $0x238] sm:$0xf0]  ;;  %s3222_s25 = smov 384   ;;  %s3223_s26 = smov 24  }
  0x9a   :  { %1633 = vmatpush.bf16.msra.mxu2 %v2194_v31  ;;  %v3079_v31 = vld [vmem:[%s4638_s1 + $0x37c] sm:$0xf]  ;;  %v2842_v36 = vor.u32 %v3155_v30, %v2841_v29  ;;  %v2699_v30 = vld [vmem:[%s4638_s1 + $0x4bc] sm:$0xf0] }
  0x9b   :  { %1647 = vmatpush.bf16.msra.mxu3 %v2482_v35  ;;  %v3151_v35 = vld [vmem:[%s4638_s1 + $0x5bc] sm:$0xf] }
  0x9c   :  { %1606 = vmatpush.bf16.msra.mxu0 %v2442_v40  ;;  %v2558_v40 = vor.u32 %v3079_v31, %v2555_v32  ;;  %v3115_v29 = vld [vmem:[%s4638_s1 + $0x49c] sm:$0xf]  ;;  %v2414_v31 = vor.u32 %v3043_v19, %v2411_v20  ;;  %v2777_v19 = vld [vmem:[%s4638_s1 + $0x530] sm:$0xf]  ;;  %v3138_v20 = vld [vmem:[%s4638_s1 + $0x550] sm:$0xf0] }
  0x9d   :  { %1620 = vmatpush.bf16.msra.mxu1 %v2730_v41  ;;  %v2805_v41 = vld [vmem:[%s4638_s1 + $0x570] sm:$0xf]  ;;  %v2971_v32 = vld [vmem:[%s4638_s1 + $0x1c] sm:$0xf] }
  0x9e   :  { %1634 = vmatpush.bf16.msra.mxu2 %v2158_v45  ;;  %v2846_v45 = vor.u32 %v3151_v35, %v2843_v37  ;;  %v2806_v48 = vor.u32 %v3146_v42, %v2805_v41  ;;  %v2669_v35 = vld [vmem:[%s4638_s1 + $0x458] sm:$0xf]  ;;  %v3111_v37 = vld [vmem:[%s4638_s1 + $0x478] sm:$0xf0]  ;;  %v2921_v42 = vld [vmem:[%s4638_s1 + $0x650] sm:$0xf] }
  0x9f   :  { %1648 = vmatpush.bf16.msra.mxu3 %v2446_v49  ;;  %v2807_v49 = vld [vmem:[%s4638_s1 + $0x594] sm:$0xf0]  ;;  %v2922_v50 = vor.u32 %v3174_v43, %v2921_v42 }
  0xa0   :  { %1607 = vmatpush.bf16.msra.mxu0 %v2406_v56  ;;  %v2483_v56 = vld [vmem:[%s4638_s1 + $0x30c] sm:$0xf0]  ;;  %v4405_v11 = vpop.f32.mrf.mxu0 }
  0xa1   :  { %1621 = vmatpush.bf16.msra.mxu1 %v2694_v57  ;;  %v2810_v57 = vor.u32 %v3142_v47, %v2807_v49  ;;  %v2346_v47 = vor.u32 %v3030_v39, %v2345_v38 }
  0xa2   :  { %1635 = vmatpush.bf16.msra.mxu2 %v2122_v59  ;;  %v3133_v59 = vld [vmem:[%s4638_s1 + $0x52c] sm:$0xf] }
  0xa3   :  { %1649 = vmatpush.bf16.msra.mxu3 %v2410_v2  ;;  %1608 = vmatmul.bf16.vlgmr.msra.gmra.mxu0 %v3544_v18  ;;  %v2733_v2 = vld [vmem:[%s4638_s1 + $0x4e0] sm:$0xf]  ;;  %v2774_v6 = vor.u32 %v3133_v59, %v2771_v61  ;;  %v3093_v61 = vld [vmem:[%s4638_s1 + $0x3e8] sm:$0xf0] }
  0xa4   :  { %1656 = vmatpush.bf16.msrb.mxu0 %v2950_v60  ;;  %1622 = vmatmul.bf16.vlgmr.msra.gmra.mxu1 %v3506_v1  ;;  %v2770_v60 = vor.u32 %v3137_v54, %v2769_v53  ;;  %v2734_v9 = vor.u32 %v3128_v3, %v2733_v2  ;;  %v3021_v53 = vld [vmem:[%s4638_s1 + $0x1a8] sm:$0xf0]  ;;  %v2885_v54 = vld [vmem:[%s4638_s1 + $0x608] sm:$0xf] }
  0xa5   :  { %1670 = vmatpush.bf16.msrb.mxu1 %v2378_v8  ;;  %1636 = vmatmul.bf16.vlgmr.msra.gmra.mxu2 %v3529_v12  ;;  %v3124_v8 = vld [vmem:[%s4638_s1 + $0x4e4] sm:$0xf] }
  0xa6   :  { %1684 = vmatpush.bf16.msrb.mxu2 %v2666_v0  ;;  %1650 = vmatmul.bf16.vlgmr.msra.gmra.mxu3 %v3544_v18  ;;  %v2486_v0 = vor.u32 %v3061_v55, %v2483_v56  ;;  %v3165_v55 = vld [vmem:[%s4638_s1 + $0x628] sm:$0xf0] }
  0xa7   :  { %1698 = vmatpush.bf16.msrb.mxu3 %v2954_v7  ;;  %v2198_v7 = vor.u32 %v2989_v62, %v2195_v63  ;;  %v2886_v59 = vor.u32 %v3165_v55, %v2885_v54  ;;  %v2849_v62 = vld [vmem:[%s4638_s1 + $0x5c0] sm:$0xf]  ;;  %v3156_v63 = vld [vmem:[%s4638_s1 + $0x5e0] sm:$0xf0]  ;;  %v3057_v54 = vld [vmem:[%s4638_s1 + $0x2c8] sm:$0xf0] }
  0xa8   :  { %1657 = vmatpush.bf16.msrb.mxu0 %v2914_v10  ;;  %v2735_v10 = vld [vmem:[%s4638_s1 + $0x504] sm:$0xf0]  ;;  %v4463_v41 = vpop.f32.mrf.mxu2  ;;  %v4476_v49 = vpop.f32.mrf.mxu0 }
  0xa9   :  { %1671 = vmatpush.bf16.msrb.mxu1 %v2342_v22  ;;  %v2381_v22 = vld [vmem:[%s4638_s1 + $0x218] sm:$0xf] }
  0xaa   :  { %1685 = vmatpush.bf16.msrb.mxu2 %v2630_v15  ;;  %v2450_v15 = vor.u32 %v3052_v4, %v2447_v5  ;;  %v2850_v4 = vor.u32 %v3156_v63, %v2849_v62 }
  0xab   :  { %1699 = vmatpush.bf16.msrb.mxu3 %v2918_v21  ;;  %v4425_v21 = vpop.f32.mrf.mxu1 }
  0xac   :  { %1658 = vmatpush.bf16.msrb.mxu0 %v2878_v24  ;;  %v2738_v24 = vor.u32 %v3124_v8, %v2735_v10  ;;  %v2273_v8 = vld [vmem:[%s4638_s1 + $0x140] sm:$0xf] }
  0xad   :  { %1672 = vmatpush.bf16.msrb.mxu1 %v2306_v34  ;;  %v2382_v34 = vor.u32 %v3039_v23, %v2381_v22  ;;  %v2561_v10 = vld [vmem:[%s4638_s1 + $0x380] sm:$0xf]  ;;  %v2237_v22 = vld [vmem:[%s4638_s1 + $0xf8] sm:$0xf]  ;;  %v3003_v23 = vld [vmem:[%s4638_s1 + $0x118] sm:$0xf0] }
  0xae   :  { %1686 = vmatpush.bf16.msrb.mxu2 %v2594_v28  ;;  %v2698_v28 = vor.u32 %v3119_v17, %v2697_v16 }
  0xaf   :  { %1700 = vmatpush.bf16.msrb.mxu3 %v2882_v33  ;;  %v2123_v33 = vld [vmem:[%s4638_s1 + $0x3c] sm:$0xf0] }
  0xb0   :  { %1659 = vmatpush.bf16.msrb.mxu0 %v2842_v36  ;;  %v2958_v36 = vor.u32 %v3183_v27, %v2957_v26  ;;  %v2126_v44 = vor.u32 %v2971_v32, %v2123_v33  ;;  %v3075_v26 = vld [vmem:[%s4638_s1 + $0x358] sm:$0xf0]  ;;  %v3129_v32 = vld [vmem:[%s4638_s1 + $0x508] sm:$0xf0] }
  0xb1   :  { %1673 = vmatpush.bf16.msrb.mxu1 %v2270_v46  ;;  %v2670_v46 = vor.u32 %v3111_v37, %v2669_v35  ;;  %v2994_v35 = vld [vmem:[%s4638_s1 + $0xd0] sm:$0xf0] }
  0xb2   :  { %1687 = vmatpush.bf16.msrb.mxu2 %v2558_v40  ;;  %v2702_v40 = vor.u32 %v3115_v29, %v2699_v30  ;;  %v2778_v29 = vor.u32 %v3138_v20, %v2777_v19 }
  0xb3   :  { %1701 = vmatpush.bf16.msrb.mxu3 %v2846_v45  ;;  %v4471_v45 = vpop.f32.mrf.mxu3  ;;  %v4495_v56 = vpop.f32.mrf.mxu1 }
  0xb4   :  { %1660 = vmatpush.bf16.msrb.mxu0 %v2806_v48  ;;  %v2633_v48 = vld [vmem:[%s4638_s1 + $0x410] sm:$0xf] }
  0xb5   :  { %1674 = vmatpush.bf16.msrb.mxu1 %v2234_v58 }
  0xb6   :  { %1688 = vmatpush.bf16.msrb.mxu2 %v2522_v52  ;;  %v2309_v52 = vld [vmem:[%s4638_s1 + $0x188] sm:$0xf] }
  0xb7   :  { %1702 = vmatpush.bf16.msrb.mxu3 %v2810_v57  ;;  %v2634_v57 = vor.u32 %v3102_v51, %v2633_v48  ;;  %v2310_v58 = vor.u32 %v3021_v53, %v2309_v52  ;;  %v3120_v48 = vld [vmem:[%s4638_s1 + $0x4c0] sm:$0xf0]  ;;  %v2985_v51 = vld [vmem:[%s4638_s1 + $0x88] sm:$0xf0]  ;;  %v2453_v52 = vld [vmem:[%s4638_s1 + $0x2a8] sm:$0xf] }
  0xb8   :  { %1661 = vmatpush.bf16.msrb.mxu0 %v2770_v60  ;;  %v2597_v60 = vld [vmem:[%s4638_s1 + $0x3c8] sm:$0xf]  ;;  %v2454_v55 = vor.u32 %v3057_v54, %v2453_v52 }
  0xb9   :  { %1675 = vmatpush.bf16.msrb.mxu1 %v2198_v7  ;;  %v2598_v2 = vor.u32 %v3093_v61, %v2597_v60  ;;  %v3147_v7 = vld [vmem:[%s4638_s1 + $0x598] sm:$0xf0]  ;;  %v2417_v60 = vld [vmem:[%s4638_s1 + $0x260] sm:$0xf] }
  0xba   :  { %1689 = vmatpush.bf16.msrb.mxu2 %v2486_v0  ;;  %v4511_v0 = vpop.f32.mrf.mxu2 }
  0xbb   :  { %1703 = vmatpush.bf16.msrb.mxu3 %v2774_v6  ;;  %v1429_v3 = vpop.f32.mrf.mxu3  ;;  %v2813_v6 = vld [vmem:[%s4638_s1 + $0x578] sm:$0xf] }
  0xbc   :  { %1662 = vmatpush.bf16.msrb.mxu0 %v2734_v9  ;;  %v3012_v9 = vld [vmem:[%s4638_s1 + $0x160] sm:$0xf0]  ;;  %v2814_v17 = vor.u32 %v3147_v7, %v2813_v6 }
  0xbd   :  { %1676 = vmatpush.bf16.msrb.mxu1 %v2162_v25  ;;  %v2274_v14 = vor.u32 %v3012_v9, %v2273_v8  ;;  %v2238_v25 = vor.u32 %v3003_v23, %v2237_v22 }
  0xbe   :  { %1690 = vmatpush.bf16.msrb.mxu2 %v2450_v15  ;;  %v3084_v15 = vld [vmem:[%s4638_s1 + $0x3a0] sm:$0xf0] }
  0xbf   :  { %1704 = vmatpush.bf16.msrb.mxu3 %v2738_v24  ;;  %v2562_v16 = vor.u32 %v3084_v15, %v2561_v10  ;;  %v2525_v24 = vld [vmem:[%s4638_s1 + $0x338] sm:$0xf]  ;;  %v1400_v10 = vadd.f32 %v4425_v21, %v4405_v11 }
  0xc0   :  { %1663 = vmatpush.bf16.msrb.mxu0 %v2698_v28  ;;  %v4513_v5 = vpop.f32.mrf.mxu0  ;;  %v2526_v27 = vor.u32 %v3075_v26, %v2525_v24 }
  0xc1   :  { %1677 = vmatpush.bf16.msrb.mxu1 %v2126_v44  ;;  %v4530_v13 = vpop.f32.mrf.mxu1  ;;  %v1442_v26 = vadd.f32 %v4513_v5, %v4471_v45 }
  0xc2   :  { %1691 = vmatpush.bf16.msrb.mxu2 %v2414_v31  ;;  %v2741_v31 = vld [vmem:[%s4638_s1 + $0x4e8] sm:$0xf] }
  0xc3   :  { %1705 = vmatpush.bf16.msrb.mxu3 %v2702_v40  ;;  %1664 = vmatmul.bf16.vlgmr.msrb.gmra.mxu0 %v3506_v1  ;;  %v3066_v40 = vld [vmem:[%s4638_s1 + $0x310] sm:$0xf0] }
  0xc4   :  { %1712 = vmatpush.bf16.msra.mxu0 %v2382_v34  ;;  %1678 = vmatmul.bf16.vlgmr.msrb.gmra.mxu1 %v3529_v12  ;;  %v2201_v34 = vld [vmem:[%s4638_s1 + $0xb0] sm:$0xf] }
  0xc5   :  { %1692 = vmatmul.bf16.vlgmr.msrb.gmra.mxu2 %v3544_v18  ;;  %1726 = vmatpush.bf16.msra.mxu1 %v2670_v46  ;;  %v2202_v39 = vor.u32 %v2994_v35, %v2201_v34  ;;  %v2742_v46 = vor.u32 %v3129_v32, %v2741_v31 }
  0xc6   :  { %1740 = vmatpush.bf16.msra.mxu2 %v2958_v36  ;;  %1706 = vmatmul.bf16.vlgmr.msrb.gmra.mxu3 %v3506_v1  ;;  %v2489_v36 = vld [vmem:[%s4638_s1 + $0x2f0] sm:$0xf] }
  0xc7   :  { %v2490_v44 = vor.u32 %v3066_v40, %v2489_v36 }
  0xc8   :  { %1713 = vmatpush.bf16.msra.mxu0 %v2346_v47  ;;  %v1469_v28 = vpop.f32.mrf.mxu2  ;;  %v1443_v30 = vpop.f32.mrf.mxu0  ;;  %v2705_v47 = vld [vmem:[%s4638_s1 + $0x4a0] sm:$0xf] }
  0xc9   :  { %1727 = vmatpush.bf16.msra.mxu1 %v2634_v57  ;;  %v1444_v33 = vadd.f32 %v1443_v30, %v1429_v3  ;;  %v1483_v37 = vpop.f32.mrf.mxu3  ;;  %v1457_v38 = vpop.f32.mrf.mxu1  ;;  %v2706_v57 = vor.u32 %v3120_v48, %v2705_v47 }
  0xca   :  { %1741 = vmatpush.bf16.msra.mxu2 %v2922_v50  ;;  %v4571_v42 = vadd.f32 %v1483_v37, %v1469_v28  ;;  %v2165_v50 = vld [vmem:[%s4638_s1 + $0x68] sm:$0xf]  ;;  %v1456_v28 = vadd.f32 %v4530_v13, %v1442_v26 }
  0xcb   :  { %v4573_v43 = vadd.f32 %v1457_v38, %v1444_v33  ;;  %v2166_v53 = vor.u32 %v2985_v51, %v2165_v50 }
  0xcc   :  { %1714 = vmatpush.bf16.msra.mxu0 %v2310_v58  ;;  %v2129_v58 = vld [vmem:[%s4638_s1 + $0x20] sm:$0xf] }
  0xcd   :  { %1728 = vmatpush.bf16.msra.mxu1 %v2598_v2  ;;  %v3048_v2 = vld [vmem:[%s4638_s1 + $0x280] sm:$0xf0] }
  0xce   :  { %1742 = vmatpush.bf16.msra.mxu2 %v2886_v59  ;;  %v2976_v59 = vld [vmem:[%s4638_s1 + $0x40] sm:$0xf0]  ;;  %s3221_s1 = smov [#allocation2]  }
  0xcf   :  { %v2130_v63 = vor.u32 %v2976_v59, %v2129_v58  ;;  %s2069_s21 = sshll.u32 %s3221_s1, 4  ;;  %s2070_s21 = int_to_ptr.vmem [resolvable:$true] %s2069_s21 }
  0xd0   :  { %1715 = vmatpush.bf16.msra.mxu0 %v2274_v14  ;;  %v1471_v61 = vpop.f32.mrf.mxu2 }
  0xd1   :  { %1729 = vmatpush.bf16.msra.mxu1 %v2562_v16  ;;  %v1485_v62 = vpop.f32.mrf.mxu3 }
  0xd2   :  { %1743 = vmatpush.bf16.msra.mxu2 %v2850_v4  ;;  %v1486_v3 = vadd.f32 %v1485_v62, %v1471_v61  ;;  %v2418_v4 = vor.u32 %v3048_v2, %v2417_v60 }
  0xd4   :  { %1716 = vmatpush.bf16.msra.mxu0 %v2238_v25 }
  0xd5   :  { %1730 = vmatpush.bf16.msra.mxu1 %v2526_v27 }
  0xd6   :  { %1744 = vmatpush.bf16.msra.mxu2 %v2814_v17 }
  0xd8   :  { %1717 = vmatpush.bf16.msra.mxu0 %v2202_v39 }
  0xd9   :  { %1731 = vmatpush.bf16.msra.mxu1 %v2490_v44 }
  0xda   :  { %1745 = vmatpush.bf16.msra.mxu2 %v2778_v29 }
  0xdc   :  { %1718 = vmatpush.bf16.msra.mxu0 %v2166_v53 }
  0xdd   :  { %1732 = vmatpush.bf16.msra.mxu1 %v2454_v55 }
  0xde   :  { %1746 = vmatpush.bf16.msra.mxu2 %v2742_v46 }
  0xe0   :  { %1719 = vmatpush.bf16.msra.mxu0 %v2130_v63  ;;  %v1497_v6 = vpop.f32.mrf.mxu0 }
  0xe1   :  { %1733 = vmatpush.bf16.msra.mxu1 %v2418_v4  ;;  %v1511_v7 = vpop.f32.mrf.mxu1  ;;  %v1498_v33 = vadd.f32 %v1497_v6, %v4571_v42 }
  0xe2   :  { %1747 = vmatpush.bf16.msra.mxu2 %v2706_v57 }
  0xe3   :  { %1720 = vmatmul.bf16.vlgmr.msra.gmra.mxu0 %v3529_v12 }
  0xe4   :  { %1734 = vmatmul.bf16.vlgmr.msra.gmra.mxu1 %v3544_v18  ;;  %v1402_v18 = vadd.f32 %v4495_v56, %v4476_v49 }
  0xe5   :  { %1748 = vmatmul.bf16.vlgmr.msra.gmra.mxu2 %v3506_v1  ;;  %v1414_v1 = vadd.f32 %v4463_v41, %v1400_v10  ;;  %v1754_v10 = vlaneseq }
  0xe6   :  { %v1416_v11 = vadd.f32 %v4511_v0, %v1402_v18 }
  0xe8   :  { %v1525_v8 = vpop.f32.mrf.mxu2  ;;  %v1499_v16 = vpop.f32.mrf.mxu0 }
  0xe9   :  { %v1526_v9 = vadd.f32 %v1525_v8, %v1511_v7  ;;  %v1539_v14 = vpop.f32.mrf.mxu3  ;;  %v4610_v17 = vadd.f32 %v1499_v16, %v1486_v3  ;;  %v1513_v19 = vpop.f32.mrf.mxu1 }
  0xeb   :  { %v1540_v15 = vadd.f32 %v1539_v14, %v1526_v9  ;;  %v1755_v14 = vshrl.u32 %v1754_v10, 7 }
  0xed   :  { %1774 = vmatpush.xpose.msra.mxu3 %v1540_v15  ;;  %v1757_v15 = vand.u32 127, %v1754_v10 }
  0xef   :  { %vm1758_vm0 = vcmp.le.s32.totalorder %v1757_v15, %v1755_v14 }
  0xf0   :  { %v1527_v20 = vpop.f32.mrf.mxu2  ;;  %1775 = vmatmul.f32.vlgmr.msra.gmra.mxu3 %v1414_v1 }
  0xf1   :  { %v1528_v12 = vadd.f32 %v1527_v20, %v1513_v19  ;;  %v1541_v22 = vpop.f32.mrf.mxu3 }
  0xf3   :  { %v1542_v23 = vadd.f32 %v1541_v22, %v1528_v12 }
  0xf5   :  { %1927 = vmatpush.xpose.msrb.mxu2 %v1542_v23 }
  0xf8   :  { %1928 = vmatmul.f32.vlgmr.msrb.gmra.mxu2 %v1416_v11 }
 0x100   :  { %v1553_v21 = vpop.f32.mrf.mxu0 }
 0x101   :  { %v1567_v24 = vpop.f32.mrf.mxu1 }
 0x102   :  { %v1568_v25 = vadd.f32 %v1567_v24, %v1553_v21 }
 0x108   :  { %v1581_v41 = vpop.f32.mrf.mxu2  ;;  %v1555_v29 = vpop.f32.mrf.mxu0 }
 0x109   :  { %v1582_v27 = vadd.f32 %v1581_v41, %v1568_v25  ;;  %v1569_v49 = vpop.f32.mrf.mxu1  ;;  %v1595_v56 = vpop.f32.mrf.mxu3 }
 0x10a   :  { %v1570_v39 = vadd.f32 %v1569_v49, %v1555_v29 }
 0x10b   :  { %1794 = vmatpush.xpose.msrb.mxu3 %v1582_v27 }
 0x10e   :  { %1795 = vmatmul.f32.vlgmr.msrb.gmra.mxu3 %v1456_v28 }
 0x110   :  { %v1583_v34 = vpop.f32.mrf.mxu2 }
 0x111   :  { %v1597_v35 = vpop.f32.mrf.mxu3  ;;  %v1584_v47 = vadd.f32 %v1583_v34, %v1570_v39 }
 0x120   :  { %v1609_v30 = vpop.f32.mrf.mxu0 }
 0x121   :  { %v1610_v31 = vadd.f32 %v1609_v30, %v1595_v56  ;;  %v1623_v32 = vpop.f32.mrf.mxu1 }
 0x123   :  { %v1624_v0 = vadd.f32 %v1623_v32, %v1610_v31 }
 0x125   :  { %1814 = vmatpush.xpose.msra.mxu3 %v1624_v0 }
 0x128   :  { %1815 = vmatmul.f32.vlgmr.msra.gmra.mxu3 %v1498_v33  ;;  %v1637_v45 = vpop.f32.mrf.mxu2  ;;  %v1611_v36 = vpop.f32.mrf.mxu0 }
 0x129   :  { %v1651_v5 = vpop.f32.mrf.mxu3  ;;  %v1625_v37 = vpop.f32.mrf.mxu1  ;;  %v1612_v50 = vadd.f32 %v1611_v36, %v1597_v35 }
 0x12a   :  { %v1652_v38 = vadd.f32 %v1651_v5, %v1637_v45 }
 0x12b   :  { %v1626_v54 = vadd.f32 %v1625_v37, %v1612_v50 }
 0x130   :  { %v1639_v13 = vpop.f32.mrf.mxu2 }
 0x131   :  { %v1653_v40 = vpop.f32.mrf.mxu3 }
 0x132   :  { %v1654_v63 = vadd.f32 %v1653_v40, %v1639_v13 }
 0x140   :  { %v1665_v44 = vpop.f32.mrf.mxu0 }
 0x141   :  { %v1666_v46 = vadd.f32 %v1665_v44, %v1652_v38  ;;  %v1679_v48 = vpop.f32.mrf.mxu1 }
 0x143   :  { %1864 = vmatpush.msrb.mxu3 %v1666_v46 }
 0x145   :  { %1947 = vmatpush.xpose.msra.mxu3 %v1584_v47 }
 0x148   :  { %v1693_v51 = vpop.f32.mrf.mxu2  ;;  %v1667_v61 = vpop.f32.mrf.mxu0 }
 0x149   :  { %v1694_v42 = vadd.f32 %v1693_v51, %v1679_v48  ;;  %v1707_v52 = vpop.f32.mrf.mxu3  ;;  %v1681_v57 = vpop.f32.mrf.mxu1  ;;  %v1668_v6 = vadd.f32 %v1667_v61, %v1654_v63 }
 0x14b   :  { %v1708_v53 = vadd.f32 %v1707_v52, %v1694_v42 }
 0x14d   :  { %1884 = vmatpush.msrb.mxu0 %v1708_v53 }
 0x14f   :  { %1967 = vmatpush.xpose.msra.mxu0 %v1626_v54 }
 0x150   :  { %v1695_v55 = vpop.f32.mrf.mxu2 }
 0x151   :  { %v1696_v58 = vadd.f32 %v1695_v55, %v1681_v57  ;;  %v1709_v59 = vpop.f32.mrf.mxu3 }
 0x153   :  { %v1710_v60 = vadd.f32 %v1709_v59, %v1696_v58 }
 0x155   :  { %2036 = vmatpush.msra.mxu2 %v1710_v60 }
 0x160   :  { %v1721_v62 = vpop.f32.mrf.mxu0 }
 0x161   :  { %v1735_v2 = vpop.f32.mrf.mxu1 }
 0x162   :  { %v1736_v3 = vadd.f32 %v1735_v2, %v1721_v62 }
 0x168   :  { %v1749_v4 = vpop.f32.mrf.mxu2  ;;  %v1723_v28 = vpop.f32.mrf.mxu0 }
 0x169   :  { %v1750_v7 = vadd.f32 %v1749_v4, %v1736_v3  ;;  %v1737_v29 = vpop.f32.mrf.mxu1 }
 0x16a   :  { %v1738_v31 = vadd.f32 %v1737_v29, %v1723_v28 }
 0x16b   :  { %1904 = vmatpush.msrb.mxu1 %v1750_v7 }
 0x16d   :  { %2016 = vmatpush.msra.mxu1 %v1668_v6 }
 0x170   :  { %v1751_v33 = vpop.f32.mrf.mxu2 }
 0x171   :  { %v1752_v45 = vadd.f32 %v1751_v33, %v1738_v31 }
 0x173   :  { %v1776_v8 = vpop.f32.mrf.mxu3 }
 0x17b   :  { %v1929_v13 = vpop.f32.mrf.mxu2 }
 0x191   :  { %v1796_v9 = vpop.f32.mrf.mxu3 }
 0x192   :  { %v1797_v16 = vadd.f32 %v1796_v9, %v1776_v8 }
 0x1ab   :  { %v1816_v1 = vpop.f32.mrf.mxu3 }
 0x1ac   :  { %v1817_v19 = vadd.f32 %v1816_v1, %v1797_v16 }
 0x1ae   :  { %v1819_v20 = vmul.f32 0.05103104, %v1817_v19 }
 0x1b0   :  { %v1820_v12 = vsel %vm1758_vm0, %v1819_v20, -1e+30 }
 0x1b1   :  { %v1822_v18 = vsel %vm1821_vm1, %v1820_v12, -inf }
 0x1b2   :  { %1823 = vmax.xlane.f32.xlu0 %v1822_v18 }
 0x225   :  { %v1824_v22 = vpop.xlane.xlu0 %1823 }
 0x226   :  { %v1825_v23 = vsub.f32 %v1820_v12, %v1824_v22 }
 0x228   :  { %v1826_v11 = vmul.f32 1.442695, %v1825_v23 }
 0x22a   :  { %3187 = vpow2.f32 %v1826_v11 }
 0x230   :  { %v3188_v21 = vpop.eup %3187 }
 0x231   :  { %v1828_v24 = vsel %vm1821_vm1, %v3188_v21, 0.0 }
 0x232   :  { %1829 = vadd.xlane.f32.xlu0 %v1828_v24 }
 0x2a5   :  { %v1830_v25 = vpop.xlane.xlu0 %1829 }
 0x2a6   :  { %3189 = vrcp.f32 %v1830_v25  ;;  %v1842_v49 = vand.u32 2147483648, %v1830_v25  ;;  %v1840_v30 = vand.u32 2147483647, %v1830_v25  ;;  %vm1836_vm3 = vweird.f32 %v1830_v25 }
 0x2a8   :  { %v1843_v0 = vor.u32 1.1754944e-38, %v1842_v49  ;;  %vm1841_vm5 = vcmp.eq.f32.partialorder %v1840_v30, 8.507059e+37 }
 0x2ac   :  { %v3190_v26 = vpop.eup %3189 }
 0x2ad   :  { %v1832_v41 = vmul.f32 %v3190_v26, %v1830_v25  ;;  %vm1837_vm2 = vweird.f32 %v3190_v26 }
 0x2ae   :  { %vm1838_vm4 = vmor %vm1836_vm3, %vm1837_vm2 }
 0x2af   :  { %v1833_v27 = vsub.f32 1.0, %v1832_v41 }
 0x2b1   :  { %v1834_v56 = vmul.f32 %v3190_v26, %v1833_v27 }
 0x2b3   :  { %v1835_v32 = vadd.f32 %v3190_v26, %v1834_v56 }
 0x2b5   :  { %v1839_v34 = vsel %vm1838_vm4, %v3190_v26, %v1835_v32 }
 0x2b6   :  { %v1844_v35 = vsel %vm1841_vm5, %v1843_v0, %v1839_v34 }
 0x2b7   :  { %v1845_v5 = vmul.f32 %v3188_v21, %v1844_v35 }
 0x2b9   :  { %2959 = vmatmul.msk.f32.vlgmr.msrb.gmra.mxu3 %vm1821_vm1, %v1845_v5  ;;  %2960 = vmatmul.msk.f32.vlgmr.msrb.gmra.mxu0 %vm1821_vm1, %v1845_v5 }
 0x2ba   :  { %2961 = vmatmul.msk.f32.vlgmr.msrb.gmra.mxu1 %vm1821_vm1, %v1845_v5  ;;  %2056 = vmatpush.msrb.mxu3 %v1752_v45 }
 0x2c1   :  { %1948 = vmatmul.f32.vlgmr.msra.gmra.mxu3 %v4573_v43  ;;  %1968 = vmatmul.f32.vlgmr.msra.gmra.mxu0 %v4610_v17 }
 0x336   :  { %v1886_v36 = vpop.f32.mrf.mxu0 }
 0x337   :  { %1910 = vst [vmem:[#allocation2 + $0x8] sm:$0xff] %v1886_v36  ;;  %v1906_v37 = vpop.f32.mrf.mxu1 }
 0x338   :  { %1911 = vst [vmem:[#allocation2 + $0x10] sm:$0xff] %v1906_v37 }
 0x33c   :  { %v1866_v38 = vpop.f32.mrf.mxu3 }
 0x33d   :  { %1909 = vst [vmem:[#allocation2] sm:$0xff] %v1866_v38 }
 0x33e   :  { %v1969_v44 = vpop.f32.mrf.mxu0 }
 0x344   :  { %v1949_v39 = vpop.f32.mrf.mxu3 }
 0x345   :  { %v1950_v40 = vadd.f32 %v1949_v39, %v1929_v13 }
 0x347   :  { %v1970_v46 = vadd.f32 %v1969_v44, %v1950_v40 }
 0x349   :  { %v1972_v47 = vmul.f32 0.05103104, %v1970_v46 }
 0x34b   :  { %v1973_v48 = vsel %vm1758_vm0, %v1972_v47, -1e+30 }
 0x34c   :  { %v1974_v50 = vsel %vm1821_vm1, %v1973_v48, -inf }
 0x34d   :  { %1975 = vmax.xlane.f32.xlu1 %v1974_v50 }
 0x3c0   :  { %v1976_v43 = vpop.xlane.xlu1 %1975 }
 0x3c1   :  { %v1977_v51 = vsub.f32 %v1973_v48, %v1976_v43 }
 0x3c3   :  { %v1978_v17 = vmul.f32 1.442695, %v1977_v51 }
 0x3c5   :  { %3191 = vpow2.f32 %v1978_v17 }
 0x3cb   :  { %v3192_v42 = vpop.eup %3191 }
 0x3cc   :  { %v1980_v52 = vsel %vm1821_vm1, %v3192_v42, 0.0 }
 0x3cd   :  { %1981 = vadd.xlane.f32.xlu1 %v1980_v52 }
 0x440   :  { %v1982_v53 = vpop.xlane.xlu1 %1981 }
 0x441   :  { %3193 = vrcp.f32 %v1982_v53  ;;  %v1994_v58 = vand.u32 2147483648, %v1982_v53  ;;  %v1992_v60 = vand.u32 2147483647, %v1982_v53  ;;  %vm1988_vm7 = vweird.f32 %v1982_v53 }
 0x443   :  { %v1995_v62 = vor.u32 1.1754944e-38, %v1994_v58  ;;  %vm1993_vm9 = vcmp.eq.f32.partialorder %v1992_v60, 8.507059e+37 }
 0x447   :  { %v3194_v54 = vpop.eup %3193 }
 0x448   :  { %v1984_v55 = vmul.f32 %v3194_v54, %v1982_v53  ;;  %vm1989_vm6 = vweird.f32 %v3194_v54 }
 0x449   :  { %vm1990_vm8 = vmor %vm1988_vm7, %vm1989_vm6 }
 0x44a   :  { %v1985_v57 = vsub.f32 1.0, %v1984_v55 }
 0x44c   :  { %v1986_v59 = vmul.f32 %v3194_v54, %v1985_v57 }
 0x44e   :  { %v1987_v61 = vadd.f32 %v3194_v54, %v1986_v59 }
 0x450   :  { %v1991_v63 = vsel %vm1990_vm8, %v3194_v54, %v1987_v61 }
 0x451   :  { %v1996_v2 = vsel %vm1993_vm9, %v1995_v62, %v1991_v63 }
 0x452   :  { %v1997_v3 = vmul.f32 %v3192_v42, %v1996_v2 }
 0x454   :  { %2962 = vmatmul.msk.f32.vlgmr.msra.gmra.mxu1 %vm1821_vm1, %v1997_v3  ;;  %2963 = vmatmul.msk.f32.vlgmr.msra.gmra.mxu2 %vm1821_vm1, %v1997_v3 }
 0x455   :  { %2964 = vmatmul.msk.f32.vlgmr.msrb.gmra.mxu3 %vm1821_vm1, %v1997_v3 }
 0x4d1   :  { %v2018_v4 = vpop.f32.mrf.mxu1 }
 0x4d2   :  { %2062 = vst [vmem:[#allocation2 + $0x18] sm:$0xff] %v2018_v4 }
 0x4d7   :  { %v2038_v6 = vpop.f32.mrf.mxu2 }
 0x4d8   :  { %2063 = vst [vmem:[#allocation2 + $0x20] sm:$0xff] %v2038_v6  ;;  %v2058_v7 = vpop.f32.mrf.mxu3 }
 0x4d9   :  { %2064 = vst [vmem:[#allocation2 + $0x28] sm:$0xff] %v2058_v7 }
 0x4da   :  { %2077 = dma.vmem_to_hbm [thread:$0]  %s2070_s21, 768, %s2072_s24, [#allocation3], %s3222_s25, %s3222_s25, %s3223_s26  }
 0x4db   :  { %3219 = dma.done.wait [#allocation3], 768  }
 0x4dc   :  { %3220 = vsyncadd [#allocation3], 4294966528 }
 0x4dd   :  { %2082 = vsyncpa [#allocation3], 1 }

</bundles_post_ra>
